<compile_context>
chip_gen: v7x
topology: tpu7x:2x2x1
jax: 0.10.0
libtpu: 0.0.40
codegen_flags: <defaults>
</compile_context>

<pallas_src>
import jax
import jax.numpy as jnp
from jax.experimental import pallas as pl
from jax.experimental.pallas import tpu as pltpu

# ---------------- small synthetic ViT config ----------------
IMG = 16            # spatial size
PATCH = 4           # patch size
CH = 3              # RGB
HID = 32            # hidden size
HEADS = 2
HEAD_DIM = HID // HEADS
MLP = 64            # intermediate size
LAYERS = 2
CLASSES = 10        # total_classes
N_PATCH = (IMG // PATCH) ** 2          # 16
SEQ = N_PATCH + 1                      # 17 (CLS + patches)
SEQ_PAD = 24                           # 8-aligned sequence length
PATCH_DIM = CH * PATCH * PATCH         # 48
CPAD = 128                             # lane-dense classifier width
EPS = 1e-12                            # HF ViT layer_norm_eps

# rows of the packed per-layer vector bundle (LAYERS, NVEC, HID)
V_LN1G, V_LN1B, V_BO, V_LN2G, V_LN2B, V_B2 = range(6)
NVEC = 6


def _layernorm(v, g, b):
    mu = jnp.mean(v, axis=-1, keepdims=True)
    var = jnp.mean((v - mu) ** 2, axis=-1, keepdims=True)
    return (v - mu) * jax.lax.rsqrt(var + EPS) * g + b


# ---------------- fused forward kernel (Bblk images per grid step) ----------------
def make_vit_kernel(bblk):
    bt = bblk * SEQ_PAD   # tokens per grid step

    def vit_kernel(p_ref, pw_ref, pos_ref, wqkv_ref, bqkv_ref, wo_ref, vec_ref,
                   w1_ref, b1_ref, w2_ref, lnf_ref, wc_ref, bc_ref, o_ref):
        # p_ref:   (bt, PATCH_DIM) bf16 — per image: row0 = CLS slot (zeros),
        #          rows 1..16 = flattened patches, rows 17..23 = zero padding
        # pw_ref:  (PATCH_DIM, HID) bf16 (normalization folded: 2*W)
        # pos_ref: (SEQ_PAD, HID)   f32  (patch bias + CLS token folded, pad rows = 0)
        x = jnp.dot(p_ref[...], pw_ref[...], preferred_element_type=jnp.float32)
        x = (x.reshape(bblk, SEQ_PAD, HID) + pos_ref[...]).reshape(bt, HID)

        # key-padding mask bias for the 17->24 padding (phantom key columns)
        col = jax.lax.broadcasted_iota(jnp.int32, (1, SEQ_PAD), 1)
        kmask = jnp.where(col < SEQ, 0.0, -1e30).astype(jnp.float32)   # (1, SEQ_PAD)

        for l in range(LAYERS):                              # static unroll (LAYERS=2)
            vl = vec_ref[l]                                  # (NVEC, HID) f32

            # ---- MHSA (pre-LN): one fused QKV matmul over all heads ----
            h = _layernorm(x, vl[V_LN1G:V_LN1G + 1], vl[V_LN1B:V_LN1B + 1])
            qkv = jnp.dot(h.astype(jnp.bfloat16), wqkv_ref[l],
                          preferred_element_type=jnp.float32) + bqkv_ref[l]
            qkv = qkv.reshape(bblk, SEQ_PAD, 3 * HID)
            ctx = []
            for hh in range(HEADS):                          # static unroll (HEADS=2)
                q = qkv[:, :, hh * HEAD_DIM:(hh + 1) * HEAD_DIM]            # scale folded
                k = qkv[:, :, HID + hh * HEAD_DIM:HID + (hh + 1) * HEAD_DIM]
                v = qkv[:, :, 2 * HID + hh * HEAD_DIM:2 * HID + (hh + 1) * HEAD_DIM]
                s = jnp.einsum('bqd,bkd->bqk', q, k,
                               preferred_element_type=jnp.float32) + kmask
                s = s - jnp.max(s, axis=-1, keepdims=True)
                e = jnp.exp(s)
                pa = e * pl.reciprocal(jnp.sum(e, axis=-1, keepdims=True), approx=True)
                ctx.append(jnp.einsum('bqk,bkd->bqd', pa, v,
                                      preferred_element_type=jnp.float32))
            # heads concatenated along lanes -> single out-projection matmul
            ctx = jnp.concatenate(ctx, axis=-1).reshape(bt, HID)
            attn = jnp.dot(ctx.astype(jnp.bfloat16), wo_ref[l],
                           preferred_element_type=jnp.float32) + vl[V_BO:V_BO + 1]
            x = x + attn

            # ---- MLP (pre-LN) ----
            h2 = _layernorm(x, vl[V_LN2G:V_LN2G + 1], vl[V_LN2B:V_LN2B + 1])
            m = jnp.dot(h2.astype(jnp.bfloat16), w1_ref[l],
                        preferred_element_type=jnp.float32) + b1_ref[l]
            # TODO(synk): HF ViT default is exact (erf) GELU; tanh approximation kept for a
            # guaranteed Mosaic lowering (difference is ~1e-3 relative).
            m = jax.nn.gelu(m, approximate=True)
            x = x + jnp.dot(m.astype(jnp.bfloat16), w2_ref[l],
                            preferred_element_type=jnp.float32) + vl[V_B2:V_B2 + 1]

        # ---- final LayerNorm on CLS rows only + classifier + sigmoid (lane-dense) ----
        lnf = lnf_ref[...]                                               # (2, HID)
        cls = x.reshape(bblk, SEQ_PAD, HID)[:, 0:1, :].reshape(bblk, HID)
        cls = _layernorm(cls, lnf[0:1], lnf[1:2])
        logits = jnp.dot(cls.astype(jnp.bfloat16), wc_ref[...],
                         preferred_element_type=jnp.float32) + bc_ref[...]
        o_ref[...] = jax.nn.sigmoid(logits)                              # (bblk, CPAD)

    return vit_kernel


def _full_spec(shape):
    nd = len(shape)
    return pl.BlockSpec(shape, lambda b, _n=nd: (0,) * _n)


def _choose_bblk(batch):
    if batch <= 1:
        return 1
    # block up to 8 images per step, but keep >= 2 grid steps so both v7x TCs get work
    return min(8, max(1, batch // 2))


# ---------------- parameter init (deterministic, synthetic, HF-like layout) -------------
def init_params(key):
    def nxt():
        nonlocal key
        key, sub = jax.random.split(key)
        return sub

    std = 0.02
    params = {
        'patch_w': std * jax.random.normal(nxt(), (PATCH_DIM, HID), jnp.float32),
        'patch_b': jnp.zeros((1, HID), jnp.float32),
        'cls': std * jax.random.normal(nxt(), (1, 1, HID), jnp.float32),
        'pos': std * jax.random.normal(nxt(), (1, SEQ, HID), jnp.float32),
        'ln_g': jnp.ones((1, HID), jnp.float32),
        'ln_b': jnp.zeros((1, HID), jnp.float32),
        'cls_w': std * jax.random.normal(nxt(), (HID, CLASSES), jnp.float32),
        'cls_b': jnp.zeros((1, CLASSES), jnp.float32),
        'layers': [],
    }
    for _ in range(LAYERS):
        params['layers'].append({
            'ln1_g': jnp.ones((1, HID), jnp.float32),
            'ln1_b': jnp.zeros((1, HID), jnp.float32),
            'wqkv': std * jax.random.normal(nxt(), (HID, 3 * HID), jnp.float32),
            'bqkv': jnp.zeros((1, 3 * HID), jnp.float32),
            'wo': std * jax.random.normal(nxt(), (HID, HID), jnp.float32),
            'bo': jnp.zeros((1, HID), jnp.float32),
            'ln2_g': jnp.ones((1, HID), jnp.float32),
            'ln2_b': jnp.zeros((1, HID), jnp.float32),
            'w1': std * jax.random.normal(nxt(), (HID, MLP), jnp.float32),
            'b1': jnp.zeros((1, MLP), jnp.float32),
            'w2': std * jax.random.normal(nxt(), (MLP, HID), jnp.float32),
            'b2': jnp.zeros((1, HID), jnp.float32),
        })
    return params


# ---------------- full forward ----------------
def vit_forward(x_nchw, params):
    B = x_nchw.shape[0]
    bblk = _choose_bblk(B)
    nsteps = -(-B // bblk)            # cdiv
    bpad = nsteps * bblk
    bt = bblk * SEQ_PAD

    xf = x_nchw.astype(jnp.float32)
    # patchify: conv(kernel=stride=PATCH) == matmul over (C, ph, pw)-flattened patches
    p = xf.reshape(B, CH, IMG // PATCH, PATCH, IMG // PATCH, PATCH)
    p = p.transpose(0, 2, 4, 1, 3, 5).reshape(B, N_PATCH, PATCH_DIM)
    # row 0 = CLS slot (zeros), rows 1..16 = patches, rows 17..23 = pad; batch padded to bpad
    p_full = jnp.zeros((bpad, SEQ_PAD, PATCH_DIM), jnp.float32)
    p_full = p_full.at[:B, 1:SEQ, :].set(p)
    p_in = p_full.reshape(nsteps, bt, PATCH_DIM).astype(jnp.bfloat16)

    # fold the image normalization (x-0.5)/0.5 = 2x-1 into the patch-embed weights
    pw = (2.0 * params['patch_w']).astype(jnp.bfloat16)                  # (PATCH_DIM, HID)
    pb = params['patch_b'][0] - jnp.sum(params['patch_w'], axis=0)       # (HID,)
    # fold patch bias + CLS token into the (padded) position embeddings
    pos = jnp.zeros((SEQ_PAD, HID), jnp.float32)
    pos = pos.at[:SEQ].set(params['pos'][0] + pb[None, :])
    pos = pos.at[0].set(params['pos'][0, 0] + params['cls'][0, 0])

    def stack(name):
        return jnp.stack([lp[name] for lp in params['layers']], axis=0)

    # fused QKV with the 1/sqrt(head_dim) scale folded into the Q third
    scale = 1.0 / (HEAD_DIM ** 0.5)
    wqkv = stack('wqkv')                                                 # (L, HID, 3H)
    bqkv = stack('bqkv')                                                 # (L, 1, 3H)
    wqkv = jnp.concatenate([wqkv[:, :, :HID] * scale, wqkv[:, :, HID:]], axis=-1)
    bqkv = jnp.concatenate([bqkv[:, :, :HID] * scale, bqkv[:, :, HID:]], axis=-1)
    wqkv = wqkv.astype(jnp.bfloat16)

    wo = stack('wo').astype(jnp.bfloat16)                                # (L, HID, HID)
    w1 = stack('w1').astype(jnp.bfloat16)                                # (L, HID, MLP)
    b1 = stack('b1')                                                     # (L, 1, MLP)
    w2 = stack('w2').astype(jnp.bfloat16)                                # (L, MLP, HID)

    # pack all per-layer (1, HID) vectors into one (LAYERS, NVEC, HID) tensor
    vecs = jnp.stack([
        jnp.concatenate([lp['ln1_g'], lp['ln1_b'], lp['bo'],
                         lp['ln2_g'], lp['ln2_b'], lp['b2']], axis=0)
        for lp in params['layers']], axis=0)                             # (L, NVEC, HID)

    lnf = jnp.concatenate([params['ln_g'], params['ln_b']], axis=0)      # (2, HID)
    wc = jnp.zeros((HID, CPAD), jnp.float32).at[:, :CLASSES].set(params['cls_w'])
    wc = wc.astype(jnp.bfloat16)
    bc = jnp.zeros((1, CPAD), jnp.float32).at[:, :CLASSES].set(params['cls_b'])

    in_specs = [
        pl.BlockSpec((pl.Squeezed(), bt, PATCH_DIM), lambda b: (b, 0, 0)),  # patch slab
        _full_spec((PATCH_DIM, HID)),                        # pw (norm folded, bf16)
        _full_spec((SEQ_PAD, HID)),                          # pos (+bias, +cls)
        _full_spec((LAYERS, HID, 3 * HID)),                  # fused wqkv (Q scaled, bf16)
        _full_spec((LAYERS, 1, 3 * HID)),                    # fused bqkv (Q scaled)
        _full_spec((LAYERS, HID, HID)),                      # wo (bf16)
        _full_spec((LAYERS, NVEC, HID)),                     # packed LN/bias vectors
        _full_spec((LAYERS, HID, MLP)),                      # w1 (bf16)
        _full_spec((LAYERS, 1, MLP)),                        # b1
        _full_spec((LAYERS, MLP, HID)),                      # w2 (bf16)
        _full_spec((2, HID)),                                # final LN gamma/beta
        _full_spec((HID, CPAD)),                             # classifier weight (padded, bf16)
        _full_spec((1, CPAD)),                               # classifier bias (padded)
    ]

    out = pl.pallas_call(
        make_vit_kernel(bblk),
        out_shape=jax.ShapeDtypeStruct((nsteps, bblk, CPAD), jnp.float32),
        grid=(nsteps,),
        in_specs=in_specs,
        out_specs=pl.BlockSpec((pl.Squeezed(), bblk, CPAD), lambda b: (b, 0, 0)),
        compiler_params=pltpu.CompilerParams(dimension_semantics=("parallel",)),
    )(p_in, pw, pos, wqkv, bqkv, wo, vecs, w1, b1, w2, lnf, wc, bc)

    # drop batch/class padding: (B, CLASSES) = sigmoid(logits)
    return out.reshape(bpad, CPAD)[:B, :CLASSES]


if __name__ == "__main__":
    key = jax.random.PRNGKey(0)
    k_x, k_p = jax.random.split(key)
    # images in [0, 1] (do_rescale=False), NCHW
    x = jax.random.uniform(k_x, (2, CH, IMG, IMG), dtype=jnp.float32)
    params = init_params(k_p)

    fwd = jax.jit(vit_forward)
    out = jax.block_until_ready(fwd(x, params))
    assert out.shape == (2, CLASSES)
    assert bool(jnp.all(jnp.isfinite(out)))
    print("KERNEL_OK")
</pallas_src>

<mosaic_0001>
module attributes {stable_mosaic.version = 11 : i64} {
  func.func @vit_kernel(%arg0: i32, %arg1: memref<1x24x48xbf16, #tpu.memory_space<vmem>>, %arg2: memref<48x32xbf16, #tpu.memory_space<vmem>>, %arg3: memref<24x32xf32, #tpu.memory_space<vmem>>, %arg4: memref<2x32x96xbf16, #tpu.memory_space<vmem>>, %arg5: memref<2x1x96xf32, #tpu.memory_space<vmem>>, %arg6: memref<2x32x32xbf16, #tpu.memory_space<vmem>>, %arg7: memref<2x6x32xf32, #tpu.memory_space<vmem>>, %arg8: memref<2x32x64xbf16, #tpu.memory_space<vmem>>, %arg9: memref<2x1x64xf32, #tpu.memory_space<vmem>>, %arg10: memref<2x64x32xbf16, #tpu.memory_space<vmem>>, %arg11: memref<2x32xf32, #tpu.memory_space<vmem>>, %arg12: memref<32x128xbf16, #tpu.memory_space<vmem>>, %arg13: memref<1x128xf32, #tpu.memory_space<vmem>>, %arg14: memref<1x1x128xf32, #tpu.memory_space<vmem>>) attributes {dimension_semantics = [#tpu.dimension_semantics<parallel>], iteration_bounds = array<i64: 2>, scalar_prefetch = 0 : i64, scratch_operands = 0 : i64, tpu.core_type = #tpu.core_type<tc>, window_params = [{transform_indices = @transform_0, window_bounds = array<i64: 1, 24, 48>}, {pipeline_mode = #tpu.pipeline_mode<synchronous>, transform_indices = @transform_1, window_bounds = array<i64: 48, 32>}, {pipeline_mode = #tpu.pipeline_mode<synchronous>, transform_indices = @transform_2, window_bounds = array<i64: 24, 32>}, {pipeline_mode = #tpu.pipeline_mode<synchronous>, transform_indices = @transform_3, window_bounds = array<i64: 2, 32, 96>}, {pipeline_mode = #tpu.pipeline_mode<synchronous>, transform_indices = @transform_4, window_bounds = array<i64: 2, 1, 96>}, {pipeline_mode = #tpu.pipeline_mode<synchronous>, transform_indices = @transform_5, window_bounds = array<i64: 2, 32, 32>}, {pipeline_mode = #tpu.pipeline_mode<synchronous>, transform_indices = @transform_6, window_bounds = array<i64: 2, 6, 32>}, {pipeline_mode = #tpu.pipeline_mode<synchronous>, transform_indices = @transform_7, window_bounds = array<i64: 2, 32, 64>}, {pipeline_mode = #tpu.pipeline_mode<synchronous>, transform_indices = @transform_8, window_bounds = array<i64: 2, 1, 64>}, {pipeline_mode = #tpu.pipeline_mode<synchronous>, transform_indices = @transform_9, window_bounds = array<i64: 2, 64, 32>}, {pipeline_mode = #tpu.pipeline_mode<synchronous>, transform_indices = @transform_10, window_bounds = array<i64: 2, 32>}, {pipeline_mode = #tpu.pipeline_mode<synchronous>, transform_indices = @transform_11, window_bounds = array<i64: 32, 128>}, {pipeline_mode = #tpu.pipeline_mode<synchronous>, transform_indices = @transform_12, window_bounds = array<i64: 1, 128>}, {transform_indices = @transform_13, window_bounds = array<i64: 1, 1, 128>}]} {
    %c0 = arith.constant 0 : index
    %c0_0 = arith.constant 0 : index
    %c0_1 = arith.constant 0 : index
    %0 = vector.load %arg1[%c0, %c0_0, %c0_1] : memref<1x24x48xbf16, #tpu.memory_space<vmem>>, vector<1x24x48xbf16>
    %1 = vector.shape_cast %0 : vector<1x24x48xbf16> to vector<24x48xbf16>
    %c0_2 = arith.constant 0 : index
    %c0_3 = arith.constant 0 : index
    %2 = vector.load %arg2[%c0_2, %c0_3] : memref<48x32xbf16, #tpu.memory_space<vmem>>, vector<48x32xbf16>
    %cst = arith.constant dense<0.000000e+00> : vector<24x32xf32>
    %3 = tpu.matmul %1, %2, %cst {dimension_numbers = #tpu.dot_dimension_numbers<[1], [0], [0], [1], [0, 0, 1, 1], [], []>} : vector<24x48xbf16>, vector<48x32xbf16>, vector<24x32xf32> -> vector<24x32xf32>
    %4 = vector.shape_cast %3 : vector<24x32xf32> to vector<1x24x32xf32>
    %c0_4 = arith.constant 0 : index
    %c0_5 = arith.constant 0 : index
    %5 = vector.load %arg3[%c0_4, %c0_5] : memref<24x32xf32, #tpu.memory_space<vmem>>, vector<24x32xf32>
    %6 = vector.shape_cast %5 : vector<24x32xf32> to vector<1x24x32xf32>
    %7 = arith.addf %4, %6 : vector<1x24x32xf32>
    %8 = vector.shape_cast %7 : vector<1x24x32xf32> to vector<24x32xf32>
    %9 = tpu.iota {dimensions = array<i32: 1>} : vector<1x24xi32>
    %c17_i32 = arith.constant 17 : i32
    %10 = vector.broadcast %c17_i32 : i32 to vector<1x24xi32>
    %11 = arith.cmpi slt, %9, %10 : vector<1x24xi32>
    %cst_6 = arith.constant 0.000000e+00 : f32
    %cst_7 = arith.constant -1.000000e+30 : f32
    %12 = vector.broadcast %cst_6 : f32 to vector<1x24xf32>
    %13 = vector.broadcast %cst_7 : f32 to vector<1x24xf32>
    %14 = arith.select %11, %12, %13 : vector<1x24xi1>, vector<1x24xf32>
    %c0_8 = arith.constant 0 : index
    %c0_9 = arith.constant 0 : index
    %c0_10 = arith.constant 0 : index
    %15 = vector.load %arg7[%c0_8, %c0_9, %c0_10] : memref<2x6x32xf32, #tpu.memory_space<vmem>>, vector<1x6x32xf32>
    %16 = vector.shape_cast %15 : vector<1x6x32xf32> to vector<6x32xf32>
    %17 = vector.extract_strided_slice %16 {offsets = [0, 0], sizes = [1, 32], strides = [1, 1]} : vector<6x32xf32> to vector<1x32xf32>
    %18 = vector.extract_strided_slice %16 {offsets = [1, 0], sizes = [1, 32], strides = [1, 1]} : vector<6x32xf32> to vector<1x32xf32>
    %cst_11 = arith.constant dense<0.000000e+00> : vector<24xf32>
    %19 = vector.multi_reduction <add>, %8, %cst_11 [1] : vector<24x32xf32> to vector<24xf32>
    %20 = vector.shape_cast %19 : vector<24xf32> to vector<24x1xf32>
    %cst_12 = arith.constant 3.200000e+01 : f32
    %21 = vector.broadcast %cst_12 : f32 to vector<24x1xf32>
    %22 = arith.divf %20, %21 : vector<24x1xf32>
    %23 = vector.broadcast %22 : vector<24x1xf32> to vector<24x32xf32>
    %24 = arith.subf %8, %23 : vector<24x32xf32>
    %25 = arith.mulf %24, %24 : vector<24x32xf32>
    %cst_13 = arith.constant dense<0.000000e+00> : vector<24xf32>
    %26 = vector.multi_reduction <add>, %25, %cst_13 [1] : vector<24x32xf32> to vector<24xf32>
    %27 = vector.shape_cast %26 : vector<24xf32> to vector<24x1xf32>
    %cst_14 = arith.constant 3.200000e+01 : f32
    %28 = vector.broadcast %cst_14 : f32 to vector<24x1xf32>
    %29 = arith.divf %27, %28 : vector<24x1xf32>
    %30 = vector.broadcast %22 : vector<24x1xf32> to vector<24x32xf32>
    %31 = arith.subf %8, %30 : vector<24x32xf32>
    %cst_15 = arith.constant 9.99999996E-13 : f32
    %32 = vector.broadcast %cst_15 : f32 to vector<24x1xf32>
    %33 = arith.addf %29, %32 : vector<24x1xf32>
    %34 = math.rsqrt %33 : vector<24x1xf32>
    %35 = vector.broadcast %34 : vector<24x1xf32> to vector<24x32xf32>
    %36 = arith.mulf %31, %35 : vector<24x32xf32>
    %37 = vector.broadcast %17 : vector<1x32xf32> to vector<24x32xf32>
    %38 = arith.mulf %36, %37 : vector<24x32xf32>
    %39 = vector.broadcast %18 : vector<1x32xf32> to vector<24x32xf32>
    %40 = arith.addf %38, %39 : vector<24x32xf32>
    %41 = arith.truncf %40 : vector<24x32xf32> to vector<24x32xbf16>
    %c0_16 = arith.constant 0 : index
    %c0_17 = arith.constant 0 : index
    %c0_18 = arith.constant 0 : index
    %42 = vector.load %arg4[%c0_16, %c0_17, %c0_18] : memref<2x32x96xbf16, #tpu.memory_space<vmem>>, vector<1x32x96xbf16>
    %43 = vector.shape_cast %42 : vector<1x32x96xbf16> to vector<32x96xbf16>
    %cst_19 = arith.constant dense<0.000000e+00> : vector<24x96xf32>
    %44 = tpu.matmul %41, %43, %cst_19 {dimension_numbers = #tpu.dot_dimension_numbers<[1], [0], [0], [1], [0, 0, 1, 1], [], []>} : vector<24x32xbf16>, vector<32x96xbf16>, vector<24x96xf32> -> vector<24x96xf32>
    %c0_20 = arith.constant 0 : index
    %c0_21 = arith.constant 0 : index
    %c0_22 = arith.constant 0 : index
    %45 = vector.load %arg5[%c0_20, %c0_21, %c0_22] : memref<2x1x96xf32, #tpu.memory_space<vmem>>, vector<1x1x96xf32>
    %46 = vector.shape_cast %45 : vector<1x1x96xf32> to vector<1x96xf32>
    %47 = vector.broadcast %46 : vector<1x96xf32> to vector<24x96xf32>
    %48 = arith.addf %44, %47 : vector<24x96xf32>
    %49 = vector.shape_cast %48 : vector<24x96xf32> to vector<1x24x96xf32>
    %50 = vector.extract_strided_slice %49 {offsets = [0, 0, 0], sizes = [1, 24, 16], strides = [1, 1, 1]} : vector<1x24x96xf32> to vector<1x24x16xf32>
    %51 = vector.extract_strided_slice %49 {offsets = [0, 0, 32], sizes = [1, 24, 16], strides = [1, 1, 1]} : vector<1x24x96xf32> to vector<1x24x16xf32>
    %52 = vector.extract_strided_slice %49 {offsets = [0, 0, 64], sizes = [1, 24, 16], strides = [1, 1, 1]} : vector<1x24x96xf32> to vector<1x24x16xf32>
    "tpu.trace_start"() <{level = 10 : i32, message = "bqd,bkd->bqk"}> : () -> ()
    %cst_23 = arith.constant dense<0.000000e+00> : vector<1x24x24xf32>
    %53 = tpu.matmul %50, %51, %cst_23 {dimension_numbers = #tpu.dot_dimension_numbers<[2], [2], [1], [1], [0, 0, 0, 1, 1, 1], [0], [0]>} : vector<1x24x16xf32>, vector<1x24x16xf32>, vector<1x24x24xf32> -> vector<1x24x24xf32>
    "tpu.trace_stop"() : () -> ()
    %54 = vector.shape_cast %14 : vector<1x24xf32> to vector<1x1x24xf32>
    %55 = vector.broadcast %54 : vector<1x1x24xf32> to vector<1x24x24xf32>
    %56 = arith.addf %53, %55 : vector<1x24x24xf32>
    %cst_24 = arith.constant dense<0xFF800000> : vector<1x24xf32>
    %57 = vector.multi_reduction <maximumf>, %56, %cst_24 [2] : vector<1x24x24xf32> to vector<1x24xf32>
    %58 = vector.shape_cast %57 : vector<1x24xf32> to vector<1x24x1xf32>
    %59 = vector.broadcast %58 : vector<1x24x1xf32> to vector<1x24x24xf32>
    %60 = arith.subf %56, %59 : vector<1x24x24xf32>
    %61 = math.exp %60 : vector<1x24x24xf32>
    %cst_25 = arith.constant dense<0.000000e+00> : vector<1x24xf32>
    %62 = vector.multi_reduction <add>, %61, %cst_25 [2] : vector<1x24x24xf32> to vector<1x24xf32>
    %63 = vector.shape_cast %62 : vector<1x24xf32> to vector<1x24x1xf32>
    %64 = tpu.reciprocal %63 {approx = true} : vector<1x24x1xf32> -> vector<1x24x1xf32>
    %65 = vector.broadcast %64 : vector<1x24x1xf32> to vector<1x24x24xf32>
    %66 = arith.mulf %61, %65 : vector<1x24x24xf32>
    "tpu.trace_start"() <{level = 10 : i32, message = "bqk,bkd->bqd"}> : () -> ()
    %cst_26 = arith.constant dense<0.000000e+00> : vector<1x24x16xf32>
    %67 = tpu.matmul %66, %52, %cst_26 {dimension_numbers = #tpu.dot_dimension_numbers<[2], [1], [1], [2], [0, 0, 0, 1, 1, 2], [0], [0]>} : vector<1x24x24xf32>, vector<1x24x16xf32>, vector<1x24x16xf32> -> vector<1x24x16xf32>
    "tpu.trace_stop"() : () -> ()
    %68 = vector.extract_strided_slice %49 {offsets = [0, 0, 16], sizes = [1, 24, 16], strides = [1, 1, 1]} : vector<1x24x96xf32> to vector<1x24x16xf32>
    %69 = vector.extract_strided_slice %49 {offsets = [0, 0, 48], sizes = [1, 24, 16], strides = [1, 1, 1]} : vector<1x24x96xf32> to vector<1x24x16xf32>
    %70 = vector.extract_strided_slice %49 {offsets = [0, 0, 80], sizes = [1, 24, 16], strides = [1, 1, 1]} : vector<1x24x96xf32> to vector<1x24x16xf32>
    "tpu.trace_start"() <{level = 10 : i32, message = "bqd,bkd->bqk"}> : () -> ()
    %cst_27 = arith.constant dense<0.000000e+00> : vector<1x24x24xf32>
    %71 = tpu.matmul %68, %69, %cst_27 {dimension_numbers = #tpu.dot_dimension_numbers<[2], [2], [1], [1], [0, 0, 0, 1, 1, 1], [0], [0]>} : vector<1x24x16xf32>, vector<1x24x16xf32>, vector<1x24x24xf32> -> vector<1x24x24xf32>
    "tpu.trace_stop"() : () -> ()
    %72 = vector.shape_cast %14 : vector<1x24xf32> to vector<1x1x24xf32>
    %73 = vector.broadcast %72 : vector<1x1x24xf32> to vector<1x24x24xf32>
    %74 = arith.addf %71, %73 : vector<1x24x24xf32>
    %cst_28 = arith.constant dense<0xFF800000> : vector<1x24xf32>
    %75 = vector.multi_reduction <maximumf>, %74, %cst_28 [2] : vector<1x24x24xf32> to vector<1x24xf32>
    %76 = vector.shape_cast %75 : vector<1x24xf32> to vector<1x24x1xf32>
    %77 = vector.broadcast %76 : vector<1x24x1xf32> to vector<1x24x24xf32>
    %78 = arith.subf %74, %77 : vector<1x24x24xf32>
    %79 = math.exp %78 : vector<1x24x24xf32>
    %cst_29 = arith.constant dense<0.000000e+00> : vector<1x24xf32>
    %80 = vector.multi_reduction <add>, %79, %cst_29 [2] : vector<1x24x24xf32> to vector<1x24xf32>
    %81 = vector.shape_cast %80 : vector<1x24xf32> to vector<1x24x1xf32>
    %82 = tpu.reciprocal %81 {approx = true} : vector<1x24x1xf32> -> vector<1x24x1xf32>
    %83 = vector.broadcast %82 : vector<1x24x1xf32> to vector<1x24x24xf32>
    %84 = arith.mulf %79, %83 : vector<1x24x24xf32>
    "tpu.trace_start"() <{level = 10 : i32, message = "bqk,bkd->bqd"}> : () -> ()
    %cst_30 = arith.constant dense<0.000000e+00> : vector<1x24x16xf32>
    %85 = tpu.matmul %84, %70, %cst_30 {dimension_numbers = #tpu.dot_dimension_numbers<[2], [1], [1], [2], [0, 0, 0, 1, 1, 2], [0], [0]>} : vector<1x24x24xf32>, vector<1x24x16xf32>, vector<1x24x16xf32> -> vector<1x24x16xf32>
    "tpu.trace_stop"() : () -> ()
    %86 = tpu.concatenate %67, %85 in 2 : vector<1x24x16xf32>, vector<1x24x16xf32> -> vector<1x24x32xf32>
    %87 = vector.shape_cast %86 : vector<1x24x32xf32> to vector<24x32xf32>
    %88 = arith.truncf %87 : vector<24x32xf32> to vector<24x32xbf16>
    %c0_31 = arith.constant 0 : index
    %c0_32 = arith.constant 0 : index
    %c0_33 = arith.constant 0 : index
    %89 = vector.load %arg6[%c0_31, %c0_32, %c0_33] : memref<2x32x32xbf16, #tpu.memory_space<vmem>>, vector<1x32x32xbf16>
    %90 = vector.shape_cast %89 : vector<1x32x32xbf16> to vector<32x32xbf16>
    %cst_34 = arith.constant dense<0.000000e+00> : vector<24x32xf32>
    %91 = tpu.matmul %88, %90, %cst_34 {dimension_numbers = #tpu.dot_dimension_numbers<[1], [0], [0], [1], [0, 0, 1, 1], [], []>} : vector<24x32xbf16>, vector<32x32xbf16>, vector<24x32xf32> -> vector<24x32xf32>
    %92 = vector.extract_strided_slice %16 {offsets = [2, 0], sizes = [1, 32], strides = [1, 1]} : vector<6x32xf32> to vector<1x32xf32>
    %93 = vector.broadcast %92 : vector<1x32xf32> to vector<24x32xf32>
    %94 = arith.addf %91, %93 : vector<24x32xf32>
    %95 = arith.addf %8, %94 : vector<24x32xf32>
    %96 = vector.extract_strided_slice %16 {offsets = [3, 0], sizes = [1, 32], strides = [1, 1]} : vector<6x32xf32> to vector<1x32xf32>
    %97 = vector.extract_strided_slice %16 {offsets = [4, 0], sizes = [1, 32], strides = [1, 1]} : vector<6x32xf32> to vector<1x32xf32>
    %cst_35 = arith.constant dense<0.000000e+00> : vector<24xf32>
    %98 = vector.multi_reduction <add>, %95, %cst_35 [1] : vector<24x32xf32> to vector<24xf32>
    %99 = vector.shape_cast %98 : vector<24xf32> to vector<24x1xf32>
    %cst_36 = arith.constant 3.200000e+01 : f32
    %100 = vector.broadcast %cst_36 : f32 to vector<24x1xf32>
    %101 = arith.divf %99, %100 : vector<24x1xf32>
    %102 = vector.broadcast %101 : vector<24x1xf32> to vector<24x32xf32>
    %103 = arith.subf %95, %102 : vector<24x32xf32>
    %104 = arith.mulf %103, %103 : vector<24x32xf32>
    %cst_37 = arith.constant dense<0.000000e+00> : vector<24xf32>
    %105 = vector.multi_reduction <add>, %104, %cst_37 [1] : vector<24x32xf32> to vector<24xf32>
    %106 = vector.shape_cast %105 : vector<24xf32> to vector<24x1xf32>
    %cst_38 = arith.constant 3.200000e+01 : f32
    %107 = vector.broadcast %cst_38 : f32 to vector<24x1xf32>
    %108 = arith.divf %106, %107 : vector<24x1xf32>
    %109 = vector.broadcast %101 : vector<24x1xf32> to vector<24x32xf32>
    %110 = arith.subf %95, %109 : vector<24x32xf32>
    %cst_39 = arith.constant 9.99999996E-13 : f32
    %111 = vector.broadcast %cst_39 : f32 to vector<24x1xf32>
    %112 = arith.addf %108, %111 : vector<24x1xf32>
    %113 = math.rsqrt %112 : vector<24x1xf32>
    %114 = vector.broadcast %113 : vector<24x1xf32> to vector<24x32xf32>
    %115 = arith.mulf %110, %114 : vector<24x32xf32>
    %116 = vector.broadcast %96 : vector<1x32xf32> to vector<24x32xf32>
    %117 = arith.mulf %115, %116 : vector<24x32xf32>
    %118 = vector.broadcast %97 : vector<1x32xf32> to vector<24x32xf32>
    %119 = arith.addf %117, %118 : vector<24x32xf32>
    %120 = arith.truncf %119 : vector<24x32xf32> to vector<24x32xbf16>
    %c0_40 = arith.constant 0 : index
    %c0_41 = arith.constant 0 : index
    %c0_42 = arith.constant 0 : index
    %121 = vector.load %arg8[%c0_40, %c0_41, %c0_42] : memref<2x32x64xbf16, #tpu.memory_space<vmem>>, vector<1x32x64xbf16>
    %122 = vector.shape_cast %121 : vector<1x32x64xbf16> to vector<32x64xbf16>
    %cst_43 = arith.constant dense<0.000000e+00> : vector<24x64xf32>
    %123 = tpu.matmul %120, %122, %cst_43 {dimension_numbers = #tpu.dot_dimension_numbers<[1], [0], [0], [1], [0, 0, 1, 1], [], []>} : vector<24x32xbf16>, vector<32x64xbf16>, vector<24x64xf32> -> vector<24x64xf32>
    %c0_44 = arith.constant 0 : index
    %c0_45 = arith.constant 0 : index
    %c0_46 = arith.constant 0 : index
    %124 = vector.load %arg9[%c0_44, %c0_45, %c0_46] : memref<2x1x64xf32, #tpu.memory_space<vmem>>, vector<1x1x64xf32>
    %125 = vector.shape_cast %124 : vector<1x1x64xf32> to vector<1x64xf32>
    %126 = vector.broadcast %125 : vector<1x64xf32> to vector<24x64xf32>
    %127 = arith.addf %123, %126 : vector<24x64xf32>
    %128 = arith.mulf %127, %127 : vector<24x64xf32>
    %129 = arith.mulf %127, %128 : vector<24x64xf32>
    %cst_47 = arith.constant 4.471500e-02 : f32
    %130 = vector.broadcast %cst_47 : f32 to vector<24x64xf32>
    %131 = arith.mulf %130, %129 : vector<24x64xf32>
    %132 = arith.addf %127, %131 : vector<24x64xf32>
    %cst_48 = arith.constant 0.797884583 : f32
    %133 = vector.broadcast %cst_48 : f32 to vector<24x64xf32>
    %134 = arith.mulf %133, %132 : vector<24x64xf32>
    %135 = math.tanh %134 : vector<24x64xf32>
    %cst_49 = arith.constant 1.000000e+00 : f32
    %136 = vector.broadcast %cst_49 : f32 to vector<24x64xf32>
    %137 = arith.addf %136, %135 : vector<24x64xf32>
    %cst_50 = arith.constant 5.000000e-01 : f32
    %138 = vector.broadcast %cst_50 : f32 to vector<24x64xf32>
    %139 = arith.mulf %138, %137 : vector<24x64xf32>
    %140 = arith.mulf %127, %139 : vector<24x64xf32>
    %141 = arith.truncf %140 : vector<24x64xf32> to vector<24x64xbf16>
    %c0_51 = arith.constant 0 : index
    %c0_52 = arith.constant 0 : index
    %c0_53 = arith.constant 0 : index
    %142 = vector.load %arg10[%c0_51, %c0_52, %c0_53] : memref<2x64x32xbf16, #tpu.memory_space<vmem>>, vector<1x64x32xbf16>
    %143 = vector.shape_cast %142 : vector<1x64x32xbf16> to vector<64x32xbf16>
    %cst_54 = arith.constant dense<0.000000e+00> : vector<24x32xf32>
    %144 = tpu.matmul %141, %143, %cst_54 {dimension_numbers = #tpu.dot_dimension_numbers<[1], [0], [0], [1], [0, 0, 1, 1], [], []>} : vector<24x64xbf16>, vector<64x32xbf16>, vector<24x32xf32> -> vector<24x32xf32>
    %145 = arith.addf %95, %144 : vector<24x32xf32>
    %146 = vector.extract_strided_slice %16 {offsets = [5, 0], sizes = [1, 32], strides = [1, 1]} : vector<6x32xf32> to vector<1x32xf32>
    %147 = vector.broadcast %146 : vector<1x32xf32> to vector<24x32xf32>
    %148 = arith.addf %145, %147 : vector<24x32xf32>
    %c1 = arith.constant 1 : index
    %c0_55 = arith.constant 0 : index
    %c0_56 = arith.constant 0 : index
    %149 = vector.load %arg7[%c1, %c0_55, %c0_56] : memref<2x6x32xf32, #tpu.memory_space<vmem>>, vector<1x6x32xf32>
    %150 = vector.shape_cast %149 : vector<1x6x32xf32> to vector<6x32xf32>
    %151 = vector.extract_strided_slice %150 {offsets = [0, 0], sizes = [1, 32], strides = [1, 1]} : vector<6x32xf32> to vector<1x32xf32>
    %152 = vector.extract_strided_slice %150 {offsets = [1, 0], sizes = [1, 32], strides = [1, 1]} : vector<6x32xf32> to vector<1x32xf32>
    %cst_57 = arith.constant dense<0.000000e+00> : vector<24xf32>
    %153 = vector.multi_reduction <add>, %148, %cst_57 [1] : vector<24x32xf32> to vector<24xf32>
    %154 = vector.shape_cast %153 : vector<24xf32> to vector<24x1xf32>
    %cst_58 = arith.constant 3.200000e+01 : f32
    %155 = vector.broadcast %cst_58 : f32 to vector<24x1xf32>
    %156 = arith.divf %154, %155 : vector<24x1xf32>
    %157 = vector.broadcast %156 : vector<24x1xf32> to vector<24x32xf32>
    %158 = arith.subf %148, %157 : vector<24x32xf32>
    %159 = arith.mulf %158, %158 : vector<24x32xf32>
    %cst_59 = arith.constant dense<0.000000e+00> : vector<24xf32>
    %160 = vector.multi_reduction <add>, %159, %cst_59 [1] : vector<24x32xf32> to vector<24xf32>
    %161 = vector.shape_cast %160 : vector<24xf32> to vector<24x1xf32>
    %cst_60 = arith.constant 3.200000e+01 : f32
    %162 = vector.broadcast %cst_60 : f32 to vector<24x1xf32>
    %163 = arith.divf %161, %162 : vector<24x1xf32>
    %164 = vector.broadcast %156 : vector<24x1xf32> to vector<24x32xf32>
    %165 = arith.subf %148, %164 : vector<24x32xf32>
    %cst_61 = arith.constant 9.99999996E-13 : f32
    %166 = vector.broadcast %cst_61 : f32 to vector<24x1xf32>
    %167 = arith.addf %163, %166 : vector<24x1xf32>
    %168 = math.rsqrt %167 : vector<24x1xf32>
    %169 = vector.broadcast %168 : vector<24x1xf32> to vector<24x32xf32>
    %170 = arith.mulf %165, %169 : vector<24x32xf32>
    %171 = vector.broadcast %151 : vector<1x32xf32> to vector<24x32xf32>
    %172 = arith.mulf %170, %171 : vector<24x32xf32>
    %173 = vector.broadcast %152 : vector<1x32xf32> to vector<24x32xf32>
    %174 = arith.addf %172, %173 : vector<24x32xf32>
    %175 = arith.truncf %174 : vector<24x32xf32> to vector<24x32xbf16>
    %c1_62 = arith.constant 1 : index
    %c0_63 = arith.constant 0 : index
    %c0_64 = arith.constant 0 : index
    %176 = vector.load %arg4[%c1_62, %c0_63, %c0_64] : memref<2x32x96xbf16, #tpu.memory_space<vmem>>, vector<1x32x96xbf16>
    %177 = vector.shape_cast %176 : vector<1x32x96xbf16> to vector<32x96xbf16>
    %cst_65 = arith.constant dense<0.000000e+00> : vector<24x96xf32>
    %178 = tpu.matmul %175, %177, %cst_65 {dimension_numbers = #tpu.dot_dimension_numbers<[1], [0], [0], [1], [0, 0, 1, 1], [], []>} : vector<24x32xbf16>, vector<32x96xbf16>, vector<24x96xf32> -> vector<24x96xf32>
    %c1_66 = arith.constant 1 : index
    %c0_67 = arith.constant 0 : index
    %c0_68 = arith.constant 0 : index
    %179 = vector.load %arg5[%c1_66, %c0_67, %c0_68] : memref<2x1x96xf32, #tpu.memory_space<vmem>>, vector<1x1x96xf32>
    %180 = vector.shape_cast %179 : vector<1x1x96xf32> to vector<1x96xf32>
    %181 = vector.broadcast %180 : vector<1x96xf32> to vector<24x96xf32>
    %182 = arith.addf %178, %181 : vector<24x96xf32>
    %183 = vector.shape_cast %182 : vector<24x96xf32> to vector<1x24x96xf32>
    %184 = vector.extract_strided_slice %183 {offsets = [0, 0, 0], sizes = [1, 24, 16], strides = [1, 1, 1]} : vector<1x24x96xf32> to vector<1x24x16xf32>
    %185 = vector.extract_strided_slice %183 {offsets = [0, 0, 32], sizes = [1, 24, 16], strides = [1, 1, 1]} : vector<1x24x96xf32> to vector<1x24x16xf32>
    %186 = vector.extract_strided_slice %183 {offsets = [0, 0, 64], sizes = [1, 24, 16], strides = [1, 1, 1]} : vector<1x24x96xf32> to vector<1x24x16xf32>
    "tpu.trace_start"() <{level = 10 : i32, message = "bqd,bkd->bqk"}> : () -> ()
    %cst_69 = arith.constant dense<0.000000e+00> : vector<1x24x24xf32>
    %187 = tpu.matmul %184, %185, %cst_69 {dimension_numbers = #tpu.dot_dimension_numbers<[2], [2], [1], [1], [0, 0, 0, 1, 1, 1], [0], [0]>} : vector<1x24x16xf32>, vector<1x24x16xf32>, vector<1x24x24xf32> -> vector<1x24x24xf32>
    "tpu.trace_stop"() : () -> ()
    %188 = vector.shape_cast %14 : vector<1x24xf32> to vector<1x1x24xf32>
    %189 = vector.broadcast %188 : vector<1x1x24xf32> to vector<1x24x24xf32>
    %190 = arith.addf %187, %189 : vector<1x24x24xf32>
    %cst_70 = arith.constant dense<0xFF800000> : vector<1x24xf32>
    %191 = vector.multi_reduction <maximumf>, %190, %cst_70 [2] : vector<1x24x24xf32> to vector<1x24xf32>
    %192 = vector.shape_cast %191 : vector<1x24xf32> to vector<1x24x1xf32>
    %193 = vector.broadcast %192 : vector<1x24x1xf32> to vector<1x24x24xf32>
    %194 = arith.subf %190, %193 : vector<1x24x24xf32>
    %195 = math.exp %194 : vector<1x24x24xf32>
    %cst_71 = arith.constant dense<0.000000e+00> : vector<1x24xf32>
    %196 = vector.multi_reduction <add>, %195, %cst_71 [2] : vector<1x24x24xf32> to vector<1x24xf32>
    %197 = vector.shape_cast %196 : vector<1x24xf32> to vector<1x24x1xf32>
    %198 = tpu.reciprocal %197 {approx = true} : vector<1x24x1xf32> -> vector<1x24x1xf32>
    %199 = vector.broadcast %198 : vector<1x24x1xf32> to vector<1x24x24xf32>
    %200 = arith.mulf %195, %199 : vector<1x24x24xf32>
    "tpu.trace_start"() <{level = 10 : i32, message = "bqk,bkd->bqd"}> : () -> ()
    %cst_72 = arith.constant dense<0.000000e+00> : vector<1x24x16xf32>
    %201 = tpu.matmul %200, %186, %cst_72 {dimension_numbers = #tpu.dot_dimension_numbers<[2], [1], [1], [2], [0, 0, 0, 1, 1, 2], [0], [0]>} : vector<1x24x24xf32>, vector<1x24x16xf32>, vector<1x24x16xf32> -> vector<1x24x16xf32>
    "tpu.trace_stop"() : () -> ()
    %202 = vector.extract_strided_slice %183 {offsets = [0, 0, 16], sizes = [1, 24, 16], strides = [1, 1, 1]} : vector<1x24x96xf32> to vector<1x24x16xf32>
    %203 = vector.extract_strided_slice %183 {offsets = [0, 0, 48], sizes = [1, 24, 16], strides = [1, 1, 1]} : vector<1x24x96xf32> to vector<1x24x16xf32>
    %204 = vector.extract_strided_slice %183 {offsets = [0, 0, 80], sizes = [1, 24, 16], strides = [1, 1, 1]} : vector<1x24x96xf32> to vector<1x24x16xf32>
    "tpu.trace_start"() <{level = 10 : i32, message = "bqd,bkd->bqk"}> : () -> ()
    %cst_73 = arith.constant dense<0.000000e+00> : vector<1x24x24xf32>
    %205 = tpu.matmul %202, %203, %cst_73 {dimension_numbers = #tpu.dot_dimension_numbers<[2], [2], [1], [1], [0, 0, 0, 1, 1, 1], [0], [0]>} : vector<1x24x16xf32>, vector<1x24x16xf32>, vector<1x24x24xf32> -> vector<1x24x24xf32>
    "tpu.trace_stop"() : () -> ()
    %206 = vector.shape_cast %14 : vector<1x24xf32> to vector<1x1x24xf32>
    %207 = vector.broadcast %206 : vector<1x1x24xf32> to vector<1x24x24xf32>
    %208 = arith.addf %205, %207 : vector<1x24x24xf32>
    %cst_74 = arith.constant dense<0xFF800000> : vector<1x24xf32>
    %209 = vector.multi_reduction <maximumf>, %208, %cst_74 [2] : vector<1x24x24xf32> to vector<1x24xf32>
    %210 = vector.shape_cast %209 : vector<1x24xf32> to vector<1x24x1xf32>
    %211 = vector.broadcast %210 : vector<1x24x1xf32> to vector<1x24x24xf32>
    %212 = arith.subf %208, %211 : vector<1x24x24xf32>
    %213 = math.exp %212 : vector<1x24x24xf32>
    %cst_75 = arith.constant dense<0.000000e+00> : vector<1x24xf32>
    %214 = vector.multi_reduction <add>, %213, %cst_75 [2] : vector<1x24x24xf32> to vector<1x24xf32>
    %215 = vector.shape_cast %214 : vector<1x24xf32> to vector<1x24x1xf32>
    %216 = tpu.reciprocal %215 {approx = true} : vector<1x24x1xf32> -> vector<1x24x1xf32>
    %217 = vector.broadcast %216 : vector<1x24x1xf32> to vector<1x24x24xf32>
    %218 = arith.mulf %213, %217 : vector<1x24x24xf32>
    "tpu.trace_start"() <{level = 10 : i32, message = "bqk,bkd->bqd"}> : () -> ()
    %cst_76 = arith.constant dense<0.000000e+00> : vector<1x24x16xf32>
    %219 = tpu.matmul %218, %204, %cst_76 {dimension_numbers = #tpu.dot_dimension_numbers<[2], [1], [1], [2], [0, 0, 0, 1, 1, 2], [0], [0]>} : vector<1x24x24xf32>, vector<1x24x16xf32>, vector<1x24x16xf32> -> vector<1x24x16xf32>
    "tpu.trace_stop"() : () -> ()
    %220 = tpu.concatenate %201, %219 in 2 : vector<1x24x16xf32>, vector<1x24x16xf32> -> vector<1x24x32xf32>
    %221 = vector.shape_cast %220 : vector<1x24x32xf32> to vector<24x32xf32>
    %222 = arith.truncf %221 : vector<24x32xf32> to vector<24x32xbf16>
    %c1_77 = arith.constant 1 : index
    %c0_78 = arith.constant 0 : index
    %c0_79 = arith.constant 0 : index
    %223 = vector.load %arg6[%c1_77, %c0_78, %c0_79] : memref<2x32x32xbf16, #tpu.memory_space<vmem>>, vector<1x32x32xbf16>
    %224 = vector.shape_cast %223 : vector<1x32x32xbf16> to vector<32x32xbf16>
    %cst_80 = arith.constant dense<0.000000e+00> : vector<24x32xf32>
    %225 = tpu.matmul %222, %224, %cst_80 {dimension_numbers = #tpu.dot_dimension_numbers<[1], [0], [0], [1], [0, 0, 1, 1], [], []>} : vector<24x32xbf16>, vector<32x32xbf16>, vector<24x32xf32> -> vector<24x32xf32>
    %226 = vector.extract_strided_slice %150 {offsets = [2, 0], sizes = [1, 32], strides = [1, 1]} : vector<6x32xf32> to vector<1x32xf32>
    %227 = vector.broadcast %226 : vector<1x32xf32> to vector<24x32xf32>
    %228 = arith.addf %225, %227 : vector<24x32xf32>
    %229 = arith.addf %148, %228 : vector<24x32xf32>
    %230 = vector.extract_strided_slice %150 {offsets = [3, 0], sizes = [1, 32], strides = [1, 1]} : vector<6x32xf32> to vector<1x32xf32>
    %231 = vector.extract_strided_slice %150 {offsets = [4, 0], sizes = [1, 32], strides = [1, 1]} : vector<6x32xf32> to vector<1x32xf32>
    %cst_81 = arith.constant dense<0.000000e+00> : vector<24xf32>
    %232 = vector.multi_reduction <add>, %229, %cst_81 [1] : vector<24x32xf32> to vector<24xf32>
    %233 = vector.shape_cast %232 : vector<24xf32> to vector<24x1xf32>
    %cst_82 = arith.constant 3.200000e+01 : f32
    %234 = vector.broadcast %cst_82 : f32 to vector<24x1xf32>
    %235 = arith.divf %233, %234 : vector<24x1xf32>
    %236 = vector.broadcast %235 : vector<24x1xf32> to vector<24x32xf32>
    %237 = arith.subf %229, %236 : vector<24x32xf32>
    %238 = arith.mulf %237, %237 : vector<24x32xf32>
    %cst_83 = arith.constant dense<0.000000e+00> : vector<24xf32>
    %239 = vector.multi_reduction <add>, %238, %cst_83 [1] : vector<24x32xf32> to vector<24xf32>
    %240 = vector.shape_cast %239 : vector<24xf32> to vector<24x1xf32>
    %cst_84 = arith.constant 3.200000e+01 : f32
    %241 = vector.broadcast %cst_84 : f32 to vector<24x1xf32>
    %242 = arith.divf %240, %241 : vector<24x1xf32>
    %243 = vector.broadcast %235 : vector<24x1xf32> to vector<24x32xf32>
    %244 = arith.subf %229, %243 : vector<24x32xf32>
    %cst_85 = arith.constant 9.99999996E-13 : f32
    %245 = vector.broadcast %cst_85 : f32 to vector<24x1xf32>
    %246 = arith.addf %242, %245 : vector<24x1xf32>
    %247 = math.rsqrt %246 : vector<24x1xf32>
    %248 = vector.broadcast %247 : vector<24x1xf32> to vector<24x32xf32>
    %249 = arith.mulf %244, %248 : vector<24x32xf32>
    %250 = vector.broadcast %230 : vector<1x32xf32> to vector<24x32xf32>
    %251 = arith.mulf %249, %250 : vector<24x32xf32>
    %252 = vector.broadcast %231 : vector<1x32xf32> to vector<24x32xf32>
    %253 = arith.addf %251, %252 : vector<24x32xf32>
    %254 = arith.truncf %253 : vector<24x32xf32> to vector<24x32xbf16>
    %c1_86 = arith.constant 1 : index
    %c0_87 = arith.constant 0 : index
    %c0_88 = arith.constant 0 : index
    %255 = vector.load %arg8[%c1_86, %c0_87, %c0_88] : memref<2x32x64xbf16, #tpu.memory_space<vmem>>, vector<1x32x64xbf16>
    %256 = vector.shape_cast %255 : vector<1x32x64xbf16> to vector<32x64xbf16>
    %cst_89 = arith.constant dense<0.000000e+00> : vector<24x64xf32>
    %257 = tpu.matmul %254, %256, %cst_89 {dimension_numbers = #tpu.dot_dimension_numbers<[1], [0], [0], [1], [0, 0, 1, 1], [], []>} : vector<24x32xbf16>, vector<32x64xbf16>, vector<24x64xf32> -> vector<24x64xf32>
    %c1_90 = arith.constant 1 : index
    %c0_91 = arith.constant 0 : index
    %c0_92 = arith.constant 0 : index
    %258 = vector.load %arg9[%c1_90, %c0_91, %c0_92] : memref<2x1x64xf32, #tpu.memory_space<vmem>>, vector<1x1x64xf32>
    %259 = vector.shape_cast %258 : vector<1x1x64xf32> to vector<1x64xf32>
    %260 = vector.broadcast %259 : vector<1x64xf32> to vector<24x64xf32>
    %261 = arith.addf %257, %260 : vector<24x64xf32>
    %262 = arith.mulf %261, %261 : vector<24x64xf32>
    %263 = arith.mulf %261, %262 : vector<24x64xf32>
    %cst_93 = arith.constant 4.471500e-02 : f32
    %264 = vector.broadcast %cst_93 : f32 to vector<24x64xf32>
    %265 = arith.mulf %264, %263 : vector<24x64xf32>
    %266 = arith.addf %261, %265 : vector<24x64xf32>
    %cst_94 = arith.constant 0.797884583 : f32
    %267 = vector.broadcast %cst_94 : f32 to vector<24x64xf32>
    %268 = arith.mulf %267, %266 : vector<24x64xf32>
    %269 = math.tanh %268 : vector<24x64xf32>
    %cst_95 = arith.constant 1.000000e+00 : f32
    %270 = vector.broadcast %cst_95 : f32 to vector<24x64xf32>
    %271 = arith.addf %270, %269 : vector<24x64xf32>
    %cst_96 = arith.constant 5.000000e-01 : f32
    %272 = vector.broadcast %cst_96 : f32 to vector<24x64xf32>
    %273 = arith.mulf %272, %271 : vector<24x64xf32>
    %274 = arith.mulf %261, %273 : vector<24x64xf32>
    %275 = arith.truncf %274 : vector<24x64xf32> to vector<24x64xbf16>
    %c1_97 = arith.constant 1 : index
    %c0_98 = arith.constant 0 : index
    %c0_99 = arith.constant 0 : index
    %276 = vector.load %arg10[%c1_97, %c0_98, %c0_99] : memref<2x64x32xbf16, #tpu.memory_space<vmem>>, vector<1x64x32xbf16>
    %277 = vector.shape_cast %276 : vector<1x64x32xbf16> to vector<64x32xbf16>
    %cst_100 = arith.constant dense<0.000000e+00> : vector<24x32xf32>
    %278 = tpu.matmul %275, %277, %cst_100 {dimension_numbers = #tpu.dot_dimension_numbers<[1], [0], [0], [1], [0, 0, 1, 1], [], []>} : vector<24x64xbf16>, vector<64x32xbf16>, vector<24x32xf32> -> vector<24x32xf32>
    %279 = arith.addf %229, %278 : vector<24x32xf32>
    %280 = vector.extract_strided_slice %150 {offsets = [5, 0], sizes = [1, 32], strides = [1, 1]} : vector<6x32xf32> to vector<1x32xf32>
    %281 = vector.broadcast %280 : vector<1x32xf32> to vector<24x32xf32>
    %282 = arith.addf %279, %281 : vector<24x32xf32>
    %c0_101 = arith.constant 0 : index
    %c0_102 = arith.constant 0 : index
    %283 = vector.load %arg11[%c0_101, %c0_102] : memref<2x32xf32, #tpu.memory_space<vmem>>, vector<2x32xf32>
    %284 = vector.shape_cast %282 : vector<24x32xf32> to vector<1x24x32xf32>
    %285 = vector.extract_strided_slice %284 {offsets = [0, 0, 0], sizes = [1, 1, 32], strides = [1, 1, 1]} : vector<1x24x32xf32> to vector<1x1x32xf32>
    %286 = vector.shape_cast %285 : vector<1x1x32xf32> to vector<1x32xf32>
    %287 = vector.extract_strided_slice %283 {offsets = [0, 0], sizes = [1, 32], strides = [1, 1]} : vector<2x32xf32> to vector<1x32xf32>
    %288 = vector.extract_strided_slice %283 {offsets = [1, 0], sizes = [1, 32], strides = [1, 1]} : vector<2x32xf32> to vector<1x32xf32>
    %cst_103 = arith.constant dense<0.000000e+00> : vector<1xf32>
    %289 = vector.multi_reduction <add>, %286, %cst_103 [1] : vector<1x32xf32> to vector<1xf32>
    %290 = vector.shape_cast %289 : vector<1xf32> to vector<1x1xf32>
    %cst_104 = arith.constant 3.200000e+01 : f32
    %291 = vector.broadcast %cst_104 : f32 to vector<1x1xf32>
    %292 = arith.divf %290, %291 : vector<1x1xf32>
    %293 = vector.broadcast %292 : vector<1x1xf32> to vector<1x32xf32>
    %294 = arith.subf %286, %293 : vector<1x32xf32>
    %295 = arith.mulf %294, %294 : vector<1x32xf32>
    %cst_105 = arith.constant dense<0.000000e+00> : vector<1xf32>
    %296 = vector.multi_reduction <add>, %295, %cst_105 [1] : vector<1x32xf32> to vector<1xf32>
    %297 = vector.shape_cast %296 : vector<1xf32> to vector<1x1xf32>
    %cst_106 = arith.constant 3.200000e+01 : f32
    %298 = vector.broadcast %cst_106 : f32 to vector<1x1xf32>
    %299 = arith.divf %297, %298 : vector<1x1xf32>
    %300 = vector.broadcast %292 : vector<1x1xf32> to vector<1x32xf32>
    %301 = arith.subf %286, %300 : vector<1x32xf32>
    %cst_107 = arith.constant 9.99999996E-13 : f32
    %302 = vector.broadcast %cst_107 : f32 to vector<1x1xf32>
    %303 = arith.addf %299, %302 : vector<1x1xf32>
    %304 = math.rsqrt %303 : vector<1x1xf32>
    %305 = vector.broadcast %304 : vector<1x1xf32> to vector<1x32xf32>
    %306 = arith.mulf %301, %305 : vector<1x32xf32>
    %307 = arith.mulf %306, %287 : vector<1x32xf32>
    %308 = arith.addf %307, %288 : vector<1x32xf32>
    %309 = arith.truncf %308 : vector<1x32xf32> to vector<1x32xbf16>
    %c0_108 = arith.constant 0 : index
    %c0_109 = arith.constant 0 : index
    %310 = vector.load %arg12[%c0_108, %c0_109] : memref<32x128xbf16, #tpu.memory_space<vmem>>, vector<32x128xbf16>
    %cst_110 = arith.constant dense<0.000000e+00> : vector<1x128xf32>
    %311 = tpu.matmul %309, %310, %cst_110 {dimension_numbers = #tpu.dot_dimension_numbers<[1], [0], [0], [1], [0, 0, 1, 1], [], []>} : vector<1x32xbf16>, vector<32x128xbf16>, vector<1x128xf32> -> vector<1x128xf32>
    %c0_111 = arith.constant 0 : index
    %c0_112 = arith.constant 0 : index
    %312 = vector.load %arg13[%c0_111, %c0_112] : memref<1x128xf32, #tpu.memory_space<vmem>>, vector<1x128xf32>
    %313 = arith.addf %311, %312 : vector<1x128xf32>
    %314 = arith.negf %313 : vector<1x128xf32>
    %315 = math.exp %314 : vector<1x128xf32>
    %cst_113 = arith.constant 1.000000e+00 : f32
    %316 = vector.broadcast %cst_113 : f32 to vector<1x128xf32>
    %317 = arith.addf %316, %315 : vector<1x128xf32>
    %318 = arith.divf %316, %317 : vector<1x128xf32>
    %c0_114 = arith.constant 0 : index
    %c0_115 = arith.constant 0 : index
    %c0_116 = arith.constant 0 : index
    %319 = vector.load %arg14[%c0_114, %c0_115, %c0_116] : memref<1x1x128xf32, #tpu.memory_space<vmem>>, vector<1x1x128xf32>
    %320 = vector.shape_cast %319 : vector<1x1x128xf32> to vector<1x128xf32>
    %321 = vector.shape_cast %318 : vector<1x128xf32> to vector<1x1x128xf32>
    tpu.vector_store %arg14[%c0_114, %c0_115, %c0_116], %321 {strides = array<i32>} : memref<1x1x128xf32, #tpu.memory_space<vmem>>, vector<1x1x128xf32>,
    return
  }
  func.func @transform_0(%arg0: i32) -> (i32, i32, i32) {
    %c0_i32 = arith.constant 0 : i32
    %c0_i32_0 = arith.constant 0 : i32
    %c0_i32_1 = arith.constant 0 : i32
    return %arg0, %c0_i32, %c0_i32_0 : i32, i32, i32
  }
  func.func @transform_1(%arg0: i32) -> (i32, i32) {
    %c0_i32 = arith.constant 0 : i32
    %c0_i32_0 = arith.constant 0 : i32
    %c0_i32_1 = arith.constant 0 : i32
    return %c0_i32, %c0_i32_0 : i32, i32
  }
  func.func @transform_2(%arg0: i32) -> (i32, i32) {
    %c0_i32 = arith.constant 0 : i32
    %c0_i32_0 = arith.constant 0 : i32
    %c0_i32_1 = arith.constant 0 : i32
    return %c0_i32, %c0_i32_0 : i32, i32
  }
  func.func @transform_3(%arg0: i32) -> (i32, i32, i32) {
    %c0_i32 = arith.constant 0 : i32
    %c0_i32_0 = arith.constant 0 : i32
    %c0_i32_1 = arith.constant 0 : i32
    %c0_i32_2 = arith.constant 0 : i32
    return %c0_i32, %c0_i32_0, %c0_i32_1 : i32, i32, i32
  }
  func.func @transform_4(%arg0: i32) -> (i32, i32, i32) {
    %c0_i32 = arith.constant 0 : i32
    %c0_i32_0 = arith.constant 0 : i32
    %c0_i32_1 = arith.constant 0 : i32
    %c0_i32_2 = arith.constant 0 : i32
    return %c0_i32, %c0_i32_0, %c0_i32_1 : i32, i32, i32
  }
  func.func @transform_5(%arg0: i32) -> (i32, i32, i32) {
    %c0_i32 = arith.constant 0 : i32
    %c0_i32_0 = arith.constant 0 : i32
    %c0_i32_1 = arith.constant 0 : i32
    %c0_i32_2 = arith.constant 0 : i32
    return %c0_i32, %c0_i32_0, %c0_i32_1 : i32, i32, i32
  }
  func.func @transform_6(%arg0: i32) -> (i32, i32, i32) {
    %c0_i32 = arith.constant 0 : i32
    %c0_i32_0 = arith.constant 0 : i32
    %c0_i32_1 = arith.constant 0 : i32
    %c0_i32_2 = arith.constant 0 : i32
    return %c0_i32, %c0_i32_0, %c0_i32_1 : i32, i32, i32
  }
  func.func @transform_7(%arg0: i32) -> (i32, i32, i32) {
    %c0_i32 = arith.constant 0 : i32
    %c0_i32_0 = arith.constant 0 : i32
    %c0_i32_1 = arith.constant 0 : i32
    %c0_i32_2 = arith.constant 0 : i32
    return %c0_i32, %c0_i32_0, %c0_i32_1 : i32, i32, i32
  }
  func.func @transform_8(%arg0: i32) -> (i32, i32, i32) {
    %c0_i32 = arith.constant 0 : i32
    %c0_i32_0 = arith.constant 0 : i32
    %c0_i32_1 = arith.constant 0 : i32
    %c0_i32_2 = arith.constant 0 : i32
    return %c0_i32, %c0_i32_0, %c0_i32_1 : i32, i32, i32
  }
  func.func @transform_9(%arg0: i32) -> (i32, i32, i32) {
    %c0_i32 = arith.constant 0 : i32
    %c0_i32_0 = arith.constant 0 : i32
    %c0_i32_1 = arith.constant 0 : i32
    %c0_i32_2 = arith.constant 0 : i32
    return %c0_i32, %c0_i32_0, %c0_i32_1 : i32, i32, i32
  }
  func.func @transform_10(%arg0: i32) -> (i32, i32) {
    %c0_i32 = arith.constant 0 : i32
    %c0_i32_0 = arith.constant 0 : i32
    %c0_i32_1 = arith.constant 0 : i32
    return %c0_i32, %c0_i32_0 : i32, i32
  }
  func.func @transform_11(%arg0: i32) -> (i32, i32) {
    %c0_i32 = arith.constant 0 : i32
    %c0_i32_0 = arith.constant 0 : i32
    %c0_i32_1 = arith.constant 0 : i32
    return %c0_i32, %c0_i32_0 : i32, i32
  }
  func.func @transform_12(%arg0: i32) -> (i32, i32) {
    %c0_i32 = arith.constant 0 : i32
    %c0_i32_0 = arith.constant 0 : i32
    %c0_i32_1 = arith.constant 0 : i32
    return %c0_i32, %c0_i32_0 : i32, i32
  }
  func.func @transform_13(%arg0: i32) -> (i32, i32, i32) {
    %c0_i32 = arith.constant 0 : i32
    %c0_i32_0 = arith.constant 0 : i32
    %c0_i32_1 = arith.constant 0 : i32
    return %arg0, %c0_i32, %c0_i32_0 : i32, i32, i32
  }
}

</mosaic_0001>

<bundles_post_ra>
// kernel: vit_forward.1
= control target key start
LH: loop header
LB: loop body
LE: loop exit
PB: predicated region body
PF: predicated region fallthrough
CT: control target
= control target key end

     0   :  { %18 = vsyncpa [#allocation3], 0  ;;  %s3989_s0 = inlined_call_operand.vmem [shape: bf16[2,24,48], index: 0, kind: input, shape index: {}]   ;;  %s3990_s1 = inlined_call_operand.vmem [shape: bf16[48,32], index: 1, kind: input, shape index: {}]   ;;  %s3991_s2 = inlined_call_operand.vmem [shape: f32[24,32], index: 2, kind: input, shape index: {}]   ;;  %s3992_s3 = inlined_call_operand.vmem [shape: bf16[2,32,96], index: 3, kind: input, shape index: {}]   ;;  %s3993_s4 = inlined_call_operand.vmem [shape: f32[2,1,96], index: 4, kind: input, shape index: {}]   ;;  %s3994_s5 = inlined_call_operand.vmem [shape: bf16[2,32,32], index: 5, kind: input, shape index: {}]   ;;  %s3995_s6 = inlined_call_operand.vmem [shape: f32[2,6,32], index: 6, kind: input, shape index: {}]   ;;  %s3996_s7 = inlined_call_operand.vmem [shape: bf16[2,32,64], index: 7, kind: input, shape index: {}]   ;;  %s3997_s8 = inlined_call_operand.vmem [shape: f32[2,1,64], index: 8, kind: input, shape index: {}]   ;;  %s3998_s9 = inlined_call_operand.vmem [shape: bf16[2,64,32], index: 9, kind: input, shape index: {}]   ;;  %s3999_s10 = inlined_call_operand.vmem [shape: f32[2,32], index: 10, kind: input, shape index: {}]   ;;  %s4000_s11 = inlined_call_operand.vmem [shape: bf16[32,128], index: 11, kind: input, shape index: {}]   ;;  %s4001_s12 = inlined_call_operand.vmem [shape: f32[1,128], index: 12, kind: input, shape index: {}]   ;;  %s4002_s13 = inlined_call_operand.hbm [shape: f32[2,1,128], index: 13, kind: output, shape index: {}]  }
   0x1   :  { %20 = vsyncpa [#allocation3 + $0x1], 0  ;;  %s3413_s25 = smov 0   ;;  %s3415_s26 = smov 0  }
   0x2   :  { %s3417_s27 = smov 0   ;;  %s3419_s28 = smov 0  }
   0x3 LB: > { %4012 = sst [smem:[#allocation5_spill]] %s3326_s27  ;;  %s3434_s29 = sadd.s32 4294967295, %s3330_s28   ;;  %s3330_s28 = sphi %s3419_s28, %s4022_s28   ;;  %s3326_s27 = sphi %s3417_s27, %s4024_s27   ;;  %s3322_s26 = sphi %s3415_s26, %s4026_s26   ;;  %s3318_s25 = sphi %s3413_s25, %s4025_s25  }
   0x4   : > { %s2603_s30 = sadd.s32 4294967294, %s3330_s28   ;;  %s3438_s14 = sadd.s32 1, %s3330_s28  }
   0x5   : > { %4013 = sst [smem:[#allocation6_spill]] %s3438_s14  ;;  %s311_s15 = sadd.s32 1, %s3326_s27 }
   0x6   : > { %s308_s16 = ssub.s32 %s3330_s28, %s3438_s14  ;;  %p321_p0 = scmp.ne.s32.totalorder %s3326_s27, %s3322_s26 }
   0x7   : > { %p309_p1 = scmp.eq.s32.totalorder %s308_s16, 0  ;;  %p322_p2 = scmp.eq.s32.totalorder %s3434_s29, 1 }
   0x8   : > { %p327_p3 = scmp.ne.s32.totalorder %s3322_s26, %s3318_s25  ;;  %p328_p4 = scmp.eq.s32.totalorder %s2603_s30, 1 }
   0x9   : > { %s3449_s17 = scalar_select %p309_p1, %s3326_s27, %s311_s15  }
   0xa   : > { %p3451_p5 = por %p322_p2, %p321_p0  ;;  %p3455_p6 = por %p328_p4, %p327_p3 }
   0xb   : > { %4014 = sst [smem:[#allocation7_spill]] %s3449_s17  ;;  %p2606_p7 = scmp.ge.s32.totalorder %s3330_s28, 1 }
   0xc   : > { %p390_p8 = scmp.lt.s32.totalorder %s3330_s28, 3 }
   0xe   : > { %p391_p9 = pnand %p2606_p7, %p390_p8 }
   0xf   : > { %v3151_v0 = vld [vmem:[%s3990_s1] sm:$0xff] (!%p391_p9)   ;;  %p433_p10 = scmp.lt.s32.totalorder (!%p391_p9), %s3434_s29, 1  ;;  %v3152_v1 = vld [vmem:[%s3990_s1 + $0x8] sm:$0xff] (!%p391_p9)   ;;  %vm474_vm0 = vcmask (!%p391_p9), 392192   ;;  %v3153_v2 = vld [vmem:[%s3990_s1 + $0x10] sm:$0xff] (!%p391_p9)   ;;  %vm540_vm1 = vcmask (!%p391_p9), 261120   ;;  %v535_v42 = vlaneseq (!%p391_p9) }
  0x10   : > { %394 = sbr.rel (%p391_p9) target bundleno = 6513 (0x1971), region = 72  ;;  %2813 = vmatprep.subr.bf16.mxu0 (!%p391_p9), %v3151_v0  ;;  %v531_v5 = vld [vmem:[%s3991_s2 + $0x10] sm:$0xff] (!%p391_p9)  ;;  %v529_v6 = vld [vmem:[%s3991_s2] sm:$0xff] (!%p391_p9)  ;;  %v530_v10 = vld [vmem:[%s3991_s2 + $0x8] sm:$0xff] (!%p391_p9)  ;;  %s3333_s23 = smov (!%p391_p9), 96   ;;  %vm3334_vm2 = vmmov (!%p391_p9), 0  }
  0x11   : > { %2814 = vmatpush3.bf16.msra.mxu0 (!%p391_p9), %v3151_v0  ;;  %v3156_v33 = vld [vmem:[%s3992_s3] sm:$0xff] (!%p391_p9)   ;;  %v3157_v34 = vld [vmem:[%s3992_s3 + $0x8] sm:$0xff] (!%p391_p9)   ;;  %v3509_v45 = vshrl.u32 (!%p391_p9), %v535_v42, 7  ;;  %vm683_vm3 = vcmask (!%p391_p9), 130048   ;;  %vm776_vm6 = vcmask (!%p391_p9), 195584   ;;  %s4010_s17 = smov (!%p391_p9), 64  }
  0x12   : > { %2815 = vmatprep.subr.bf16.mxu0 (!%p391_p9), %v3152_v1  ;;  %2823 = vmatprep.subr.bf16.mxu1 (!%p391_p9), %v3156_v33  ;;  %v3515_v47 = vld [vmem:[%s3995_s6] sm:$0x3f] (!%p391_p9)  ;;  %vm3551_vm4 = vmpackc.low (!%p391_p9), %vm683_vm3, %vm683_vm3  ;;  %s3339_s27 = smov (!%p391_p9), 112   ;;  %s4008_s14 = smov (!%p391_p9), 48   ;;  %vm1430_vm7 = vcmask (!%p391_p9), 523264   ;;  %vm2448_vm8 = vcmask (!%p391_p9), 253952  }
  0x13   : > { %2824 = vmatpush3.bf16.msra.mxu1 (!%p391_p9), %v3156_v33  ;;  %v583_v46 = vsub.s32 (!%p391_p9), 0, %v3509_v45  ;;  %v590_v51 = vsub.s32 (!%p391_p9), 1, %v3509_v45  ;;  %s4021_s30 = smov (!%p391_p9), 16   ;;  %s431_s15 = sand.u32 (!%p391_p9), 1, %s3322_s26  }
  0x14   : > { %2825 = vmatprep.subr.bf16.mxu1 (!%p391_p9), %v3157_v34  ;;  %s432_s20 = scalar_lea.vmem (!%p391_p9), [#allocation2], %s431_s15 }
  0x15   : > { %2816 = vmatpush3.bf16.msra.mxu0 (!%p391_p9), %v3152_v1  ;;  %v584_v50 = vrot.slane (!%p391_p9), %v3515_v47, %v583_v46  ;;  %v591_v57 = vrot.slane (!%p391_p9), %v3515_v47, %v590_v51  ;;  %v2615_v1 = vld [vmem:[%s3993_s4] ss:$0 sm:$0xff] (!%p391_p9)  ;;  %s2548_s22 = sshll.u32 (!%p391_p9), %s432_s20, 4  ;;  %s3949_s22 = int_to_ptr.vmem [resolvable:$true] %s2548_s22 }
  0x16   : > { %2817 = vmatprep.subr.bf16.mxu0 (!%p391_p9), %v3153_v2 }
  0x17   : > { %s434_s24 = scalar_select %p433_p10, %s3434_s29, 1  ;;  %2826 = vmatpush3.bf16.msra.mxu1 %v3157_v34 }
  0x19   : > { %s3051_s16 = smul.u32 12, %s434_s24  ;;  %2818 = vmatpush3.bf16.msra.mxu0 %v3153_v2  ;;  %v3332_v2 = vmov 0.0|0.0   ;;  %s3338_s24 = smov 80  }
  0x1a   : > { %3023 = vmatprep.subr.bf16.mxu1 %v3332_v2  ;;  %3027 = vmatprep.subr.bf16.mxu0 %v3332_v2 }
  0x1b   : > { %s437_s21 = scalar_lea.vmem %s3989_s0, %s3051_s16  ;;  %s2718_s16 = sshll.u32 %s3434_s29, 4 }
  0x1c   : > { %v3154_v3 = vld [vmem:[%s437_s21] sm:$0xff]   ;;  %v3155_v4 = vld [vmem:[%s437_s21 + $0x8] ss:$0 sps:$4 sm:$0xff]   ;;  %s4006_s21 = smov 16   ;;  %s3342_s29 = smov [#allocation2]  }
  0x1d   : > { %2819 = vmatprep.mubr.msk.bf16.mxu0 %vm474_vm0, %v3154_v3 }
  0x1e   : > { %2820 = vmatmul.mubr.msk.bf16.vlgmr.msra.gmra.mrb[0].mxu0 %vm474_vm0, %v3155_v4 }
  0xf1   : > { %v2821_v7 = vpop.f32.mrb[0].mxu0 }
  0xf2   : > { %v3481_v8 = vadd.f32 %v2821_v7, %v531_v5  ;;  %v515_v9 = vpop.f32.mrb[1].mxu0 }
  0xf3   : > { %v3486_v11 = vadd.f32 %v529_v6, %v515_v9  ;;  %v2822_v12 = vpop.f32.mrb[2].mxu0 }
  0xf4   : > { %v518_v13 = vpop.f32.mrb[3].mxu0  ;;  %v547_v14 = vsel %vm540_vm1, %v3481_v8, 0.0 }
  0xf5   : > { %v3490_v15 = vadd.f32 %v530_v10, %v518_v13  ;;  %548 = vadd.xlane.f32.xlu1 %v547_v14  ;;  %v541_v16 = vsel %vm540_vm1, %v3486_v11, 0.0  ;;  %v3335_v13 = vmov 0.0  }
  0xf6   : > { %542 = vadd.xlane.f32.xlu0 %v541_v16  ;;  %2852 = vmatprep.mubr.msk.f32.mxu0 %vm3334_vm2, %v3335_v13 }
  0xf7   : > { %v544_v17 = vsel %vm540_vm1, %v3490_v15, 0.0 }
  0xfa   : > { %545 = vadd.xlane.f32.xlu0 %v544_v17 }
 0x182   : > { %v549_v18 = vpop.xlane.xlu1 %548 }
 0x183   : > { %v553_v19 = vmul.f32 0.03125, %v549_v18  ;;  %v543_v20 = vpop.xlane.xlu0 %542 }
 0x184   : > { %v551_v21 = vmul.f32 0.03125, %v543_v20 }
 0x185   : > { %v556_v22 = vsub.f32 %v3481_v8, %v553_v19 }
 0x186   : > { %v554_v23 = vsub.f32 %v3486_v11, %v551_v21  ;;  %v536_v21 = vand.u32 127, %v535_v42 }
 0x187   : > { %v546_v24 = vpop.xlane.xlu0 %545  ;;  %v559_v29 = vmul.f32 %v556_v22, %v556_v22 }
 0x188   : > { %v552_v25 = vmul.f32 0.03125, %v546_v24  ;;  %v557_v26 = vmul.f32 %v554_v23, %v554_v23  ;;  %vm537_vm5 = vcmp.lt.s32.totalorder %v536_v21, 17 }
 0x189   : > { %v566_v31 = vsel %vm540_vm1, %v559_v29, 0.0 }
 0x18a   : > { %v555_v27 = vsub.f32 %v3490_v15, %v552_v25  ;;  %v560_v28 = vsel %vm540_vm1, %v557_v26, 0.0 }
 0x18b   : > { %561 = vadd.xlane.f32.xlu1 %v560_v28 }
 0x18c   : > { %v558_v30 = vmul.f32 %v555_v27, %v555_v27 }
 0x18e   : > { %v563_v32 = vsel %vm540_vm1, %v558_v30, 0.0 }
 0x18f   : > { %567 = vadd.xlane.f32.xlu1 %v566_v31  ;;  %564 = vadd.xlane.f32.xlu0 %v563_v32 }
 0x218   : > { %v562_v35 = vpop.xlane.xlu1 %561 }
 0x219   : > { %v569_v36 = vmul.f32 0.03125, %v562_v35 }
 0x21b   : > { %v572_v37 = vadd.f32 1e-12, %v569_v36 }
 0x21c   : > { %v568_v38 = vpop.xlane.xlu1 %567  ;;  %v565_v39 = vpop.xlane.xlu0 %564 }
 0x21d   : > { %3178 = vrsqrt.f32 %v572_v37  ;;  %v571_v40 = vmul.f32 0.03125, %v568_v38  ;;  %v570_v41 = vmul.f32 0.03125, %v565_v39 }
 0x21f   : > { %v574_v43 = vadd.f32 1e-12, %v571_v40  ;;  %v573_v44 = vadd.f32 1e-12, %v570_v41 }
 0x221   : > { %3180 = vrsqrt.f32 %v574_v43 }
 0x222   : > { %3182 = vrsqrt.f32 %v573_v44 }
 0x227   : > { %v3179_v48 = vpop.eup %3178 }
 0x228   : > { %v578_v49 = vmul.f32 %v3179_v48, %v554_v23 }
 0x22a   : > { %v585_v56 = vmul.f32 %v584_v50, %v578_v49 }
 0x22b   : > { %v3181_v52 = vpop.eup %3180 }
 0x22c   : > { %v3183_v53 = vpop.eup %3182  ;;  %v580_v54 = vmul.f32 %v3181_v52, %v556_v22  ;;  %v592_v61 = vadd.f32 %v591_v57, %v585_v56  ;;  %v3336_v22 = vmov -1e+30  }
 0x22d   : > { %v579_v55 = vmul.f32 %v3183_v53, %v555_v27  ;;  %v3573_v23 = vsel %vm537_vm5, 0.0, %v3336_v22 }
 0x22e   : > { %v587_v58 = vmul.f32 %v584_v50, %v580_v54 }
 0x22f   : > { %v586_v59 = vmul.f32 %v584_v50, %v579_v55 }
 0x230   : > { %v594_v60 = vadd.f32 %v591_v57, %v587_v58 }
 0x231   : > { %v593_v62 = vadd.f32 %v591_v57, %v586_v59 }
 0x232   : > { %v596_v63 = vpack.c.bf16 %v594_v60, %v594_v60 }
 0x233   : > { %v595_v0 = vpack.c.bf16 %v593_v62, %v592_v61 }
 0x235   : > { %2827 = vmatprep.mubr.msk.bf16.mxu1 %vm540_vm1, %v595_v0 }
 0x236   : > { %2828 = vmatmul.mubr.msk.bf16.vlgmr.msra.gmra.mrb[0].mxu1 %vm540_vm1, %v596_v63 }
 0x237   : > { %2837 = vmatprep.mubr.msk.f32.mxu1 %vm3334_vm2, %v3335_v13 }
 0x309   : > { %v2829_v3 = vpop.f32.mrb[0].mxu1 }
 0x30a   : > { %v3531_v4 = vadd.f32 %v2829_v3, %v2615_v1  ;;  %v660_v5 = vpop.f32.mrb[1].mxu1 }
 0x30b   : > { %v2830_v6 = vpop.f32.mrb[2].mxu1  ;;  %v3535_v9 = vadd.f32 %v2615_v1, %v660_v5 }
 0x30c   : > { %681 = vrot.lane.b32.xlu1 %v3531_v4, %s3333_s23  ;;  %v663_v7 = vpop.f32.mrb[3].mxu1 }
 0x30d   : > { %v3537_v10 = vadd.f32 %v2615_v1, %v663_v7 }
 0x30f   : > { %v3541_v12 = vpack.i.bf16 %v3537_v10, %v3535_v9 }
 0x311   : > { %3102 = vrot.lane.b32.xlu0 %v3541_v12, %s3333_s23 }
 0x37e   : > { %v682_v20 = vpop.permute.xlu1 %681 }
 0x383   : > { %v3103_v14 = vpop.permute.xlu0 %3102 }
 0x384   : > { %v3105_v16 = vunpack.i.h.bf16 %v3103_v14  ;;  %v3104_v17 = vunpack.i.l.bf16 %v3103_v14 }
 0x386   : > { %v3024_v19 = vpack.c.bf16 %v3105_v16, %v3104_v17 }
 0x388   : > { %3026 = vmatpush3.bf16.xpose.msk.msra.mxu1 %vm3551_vm4, %v3024_v19 }
 0x389   : > { %2835 = vmatprep.subr.mxu1 %v3335_v13 }
 0x390   : > { %2836 = vmatpush3.xpose.msk.msra.mxu1 %vm683_vm3, %v682_v20 }
 0x391   : > { %3034 = vmatprep.subr.bf16.mxu1 %v3332_v2 }
 0x393   : > { %2838 = vmatmul.mubr.msk.f32.vlgmr.msra.gmra.mrb[4].mxu1 %vm683_vm3, %v3535_v9 }
 0x394   : > { %2840 = vmatprep.mubr.msk.f32.mxu1 %vm3334_vm2, %v3335_v13 }
 0x397   : > { %2841 = vmatmul.mubr.msk.f32.gmra.mrb[6].mxu1 %vm683_vm3, %v3537_v10 }
 0x398   : > { %2843 = vmatprep.mubr.msk.f32.mxu1 %vm3334_vm2, %v3335_v13 }
 0x39b   : > { %2844 = vmatmul.mubr.msk.f32.gmra.mrb[8].mxu1 %vm683_vm3, %v3531_v4 }
 0x39c   : > { %2882 = vmatprep.mubr.msk.f32.mxu1 %vm3334_vm2, %v3335_v13 }
 0x466   : > { %v762_v24 = vpop.f32.mrb[4].mxu1 }
 0x467   : > { %v763_v25 = vadd.f32 %v762_v24, %v3573_v23  ;;  %v2839_v26 = vpop.f32.mrb[5].mxu1 }
 0x469   : > { %v777_v27 = vsel %vm776_vm6, %v763_v25, -inf }
 0x46a   : > { %778 = vmax.xlane.f32.xlu1 %v777_v27  ;;  %v767_v28 = vpop.f32.mrb[6].mxu1 }
 0x46b   : > { %v768_v29 = vadd.f32 %v767_v28, %v3573_v23  ;;  %v2842_v30 = vpop.f32.mrb[7].mxu1 }
 0x46d   : > { %v780_v31 = vsel %vm776_vm6, %v768_v29, -inf }
 0x46e   : > { %781 = vmax.xlane.f32.xlu0 %v780_v31  ;;  %v772_v32 = vpop.f32.mrb[8].mxu1 }
 0x46f   : > { %v773_v33 = vadd.f32 %v772_v32, %v3573_v23  ;;  %v2845_v34 = vpop.f32.mrb[9].mxu1 }
 0x471   : > { %v783_v35 = vsel %vm776_vm6, %v773_v33, -inf }
 0x472   : > { %784 = vmax.xlane.f32.xlu0 %v783_v35 }
 0x4f7   : > { %v779_v36 = vpop.xlane.xlu1 %778 }
 0x4f8   : > { %v786_v37 = vsub.f32 %v763_v25, %v779_v36 }
 0x4fa   : > { %v789_v38 = vmul.f32 1.442695, %v786_v37 }
 0x4fb   : > { %v782_v39 = vpop.xlane.xlu0 %781 }
 0x4fc   : > { %3184 = vpow2.f32 %v789_v38  ;;  %v787_v40 = vsub.f32 %v768_v29, %v782_v39 }
 0x4fe   : > { %v791_v41 = vmul.f32 1.442695, %v787_v40 }
 0x4ff   : > { %v785_v49 = vpop.xlane.xlu0 %784 }
 0x500   : > { %3186 = vpow2.f32 %v791_v41  ;;  %v788_v50 = vsub.f32 %v773_v33, %v785_v49 }
 0x502   : > { %v793_v52 = vmul.f32 1.442695, %v788_v50 }
 0x504   : > { %3188 = vpow2.f32 %v793_v52 }
 0x506   : > { %v3185_v42 = vpop.eup %3184 }
 0x507   : > { %v795_v43 = vsel %vm776_vm6, %v3185_v42, 0.0 }
 0x508   : > { %796 = vadd.xlane.f32.xlu1 %v795_v43 }
 0x50a   : > { %v3187_v44 = vpop.eup %3186 }
 0x50b   : > { %v798_v48 = vsel %vm776_vm6, %v3187_v44, 0.0 }
 0x50c   : > { %799 = vadd.xlane.f32.xlu0 %v798_v48 }
 0x50e   : > { %v3189_v53 = vpop.eup %3188 }
 0x50f   : > { %v801_v54 = vsel %vm776_vm6, %v3189_v53, 0.0 }
 0x519   : > { %814 = vrot.lane.b32.xlu1 %v3531_v4, %s4010_s17 }
 0x51d   : > { %3112 = vrot.lane.b32.xlu1 %v3541_v12, %s3338_s24 }
 0x521   : > { %918 = vrot.lane.b32.xlu1 %v3531_v4, %s3338_s24 }
 0x522   : > { %3107 = vrot.lane.b32.xlu0 %v3541_v12, %s4010_s17  ;;  %s2536_s17 = scalar_lea.sflag [#allocation3], %s431_s15 }
 0x526   : > { %908 = vrot.lane.b32.xlu0 %v3535_v9, %s3339_s27 }
 0x52a   : > { %912 = vrot.lane.b32.xlu0 %v3531_v4, %s3339_s27 }
 0x545   : > { %802 = vadd.xlane.f32.xlu1 %v801_v54 }
 0x556   : > { %910 = vrot.lane.b32.xlu1 %v3537_v10, %s3339_s27 }
 0x595   : > { %v797_v55 = vpop.xlane.xlu1 %796 }
 0x596   : > { %3190 = vrcp.f32 %v797_v55 }
 0x599   : > { %v800_v56 = vpop.xlane.xlu0 %799  ;;  %v815_v58 = vpop.permute.xlu1 %814 }
 0x59a   : > { %3192 = vrcp.f32 %v800_v56 }
 0x59d   : > { %v3108_v57 = vpop.permute.xlu0 %3107  ;;  %v3113_v63 = vpop.permute.xlu1 %3112 }
 0x59e   : > { %v3110_v59 = vunpack.i.h.bf16 %v3108_v57  ;;  %v3109_v60 = vunpack.i.l.bf16 %v3108_v57  ;;  %v3115_v3 = vunpack.i.h.bf16 %v3113_v63  ;;  %v3114_v5 = vunpack.i.l.bf16 %v3113_v63 }
 0x5a0   : > { %v3028_v61 = vpack.c.bf16 %v3110_v59, %v3109_v60  ;;  %v3191_v62 = vpop.eup %3190  ;;  %v3031_v7 = vpack.c.bf16 %v3115_v3, %v3114_v5 }
 0x5a1   : > { %v807_v0 = vmul.f32 %v3191_v62, %v3185_v42  ;;  %v919_v9 = vpop.permute.xlu1 %918  ;;  %v909_v17 = vpop.permute.xlu0 %908 }
 0x5a2   : > { %3029 = vmatpush3.bf16.msra.mxu0 %v3028_v61 }
 0x5a3   : > { %2850 = vmatprep.subr.mxu0 %v3335_v13 }
 0x5a4   : > { %v3193_v1 = vpop.eup %3192 }
 0x5a5   : > { %v808_v6 = vmul.f32 %v3193_v1, %v3187_v44  ;;  %v913_v20 = vpop.permute.xlu0 %912 }
 0x5a6   : > { %2851 = vmatpush3.msra.mxu0 %v815_v58 }
 0x5a7   : > { %2853 = vmatmul.mubr.msk.f32.vlgmr.msra.gmra.mrb[4].mxu0 %vm776_vm6, %v807_v0  ;;  %3030 = vmatprep.subr.bf16.mxu0 %v3332_v2 }
 0x5a8   : > { %2855 = vmatprep.mubr.msk.f32.mxu0 %vm3334_vm2, %v3335_v13 }
 0x5ab   : > { %2856 = vmatmul.mubr.msk.f32.gmra.mrb[6].mxu0 %vm776_vm6, %v808_v6 }
 0x5ac   : > { %2858 = vmatprep.mubr.msk.f32.mxu0 %vm3334_vm2, %v3335_v13 }
 0x5ad   : > { %3033 = vmatpush3.bf16.xpose.msk.msra.mxu0 %vm3551_vm4, %v3031_v7 }
 0x5ae   : > { %2865 = vmatprep.subr.mxu0 %v3335_v13 }
 0x5b5   : > { %2866 = vmatpush3.xpose.msk.msra.mxu0 %vm683_vm3, %v919_v9 }
 0x5d2   : > { %v803_v10 = vpop.xlane.xlu1 %802 }
 0x5d3   : > { %3194 = vrcp.f32 %v803_v10  ;;  %v3158_v10 = vld [vmem:[%s3994_s5] sm:$0xff]  }
 0x5d4   : > { %2891 = vmatprep.subr.bf16.mxu0 %v3158_v10 }
 0x5d6   : > { %v911_v19 = vpop.permute.xlu1 %910 }
 0x5dd   : > { %v3195_v14 = vpop.eup %3194 }
 0x5de   : > { %v809_v16 = vmul.f32 %v3195_v14, %v3189_v53  ;;  %v3159_v14 = vld [vmem:[%s3994_s5 + $0x8] sm:$0xff]  }
 0x5e0   : > { %2859 = vmatmul.mubr.msk.f32.gmra.mrb[8].mxu0 %vm776_vm6, %v809_v16 }
 0x5e1   : > { %2867 = vmatprep.mubr.msk.f32.mxu0 %vm3334_vm2, %v3335_v13 }
 0x5e4   : > { %2868 = vmatmul.mubr.msk.f32.vlgmr.msra.gmra.mrb[10].mxu0 %vm683_vm3, %v909_v17 }
 0x5e5   : > { %2870 = vmatprep.mubr.msk.f32.mxu0 %vm3334_vm2, %v3335_v13  ;;  %2892 = vmatpush3.bf16.msra.mxu0 %v3158_v10 }
 0x5e6   : > { %2893 = vmatprep.subr.bf16.mxu0 %v3159_v14 }
 0x5e8   : > { %2871 = vmatmul.mubr.msk.f32.gmra.mrb[12].mxu0 %vm683_vm3, %v911_v19 }
 0x5e9   : > { %2873 = vmatprep.mubr.msk.f32.mxu0 %vm3334_vm2, %v3335_v13  ;;  %2894 = vmatpush3.bf16.msra.mxu0 %v3159_v14 }
 0x5ec   : > { %2874 = vmatmul.mubr.msk.f32.gmra.mrb[14].mxu0 %vm683_vm3, %v913_v20 }
 0x67a   : > { %v3620_v21 = vpop.f32.mrb[4].mxu0 }
 0x67b   : > { %v2854_v22 = vpop.f32.mrb[5].mxu0 }
 0x67e   : > { %v3622_v24 = vpop.f32.mrb[6].mxu0 }
 0x67f   : > { %v2857_v25 = vpop.f32.mrb[7].mxu0 }
 0x6b3   : > { %v3624_v26 = vpop.f32.mrb[8].mxu0 }
 0x6b4   : > { %v2860_v27 = vpop.f32.mrb[9].mxu0 }
 0x6b7   : > { %v998_v28 = vpop.f32.mrb[10].mxu0 }
 0x6b8   : > { %v999_v29 = vadd.f32 %v998_v28, %v3573_v23  ;;  %v2869_v30 = vpop.f32.mrb[11].mxu0 }
 0x6ba   : > { %v1012_v31 = vsel %vm776_vm6, %v999_v29, -inf }
 0x6bb   : > { %1013 = vmax.xlane.f32.xlu1 %v1012_v31  ;;  %v1003_v32 = vpop.f32.mrb[12].mxu0 }
 0x6bc   : > { %v1004_v33 = vadd.f32 %v1003_v32, %v3573_v23  ;;  %v2872_v34 = vpop.f32.mrb[13].mxu0 }
 0x6be   : > { %v1015_v35 = vsel %vm776_vm6, %v1004_v33, -inf }
 0x6bf   : > { %1016 = vmax.xlane.f32.xlu0 %v1015_v35  ;;  %v1008_v36 = vpop.f32.mrb[14].mxu0 }
 0x6c0   : > { %v1009_v37 = vadd.f32 %v1008_v36, %v3573_v23  ;;  %v2875_v38 = vpop.f32.mrb[15].mxu0 }
 0x6c2   : > { %v1018_v39 = vsel %vm776_vm6, %v1009_v37, -inf }
 0x6c3   : > { %1019 = vmax.xlane.f32.xlu0 %v1018_v39 }
 0x748   : > { %v1014_v40 = vpop.xlane.xlu1 %1013 }
 0x749   : > { %v1021_v41 = vsub.f32 %v999_v29, %v1014_v40 }
 0x74b   : > { %v1024_v42 = vmul.f32 1.442695, %v1021_v41 }
 0x74c   : > { %v1017_v43 = vpop.xlane.xlu0 %1016 }
 0x74d   : > { %3196 = vpow2.f32 %v1024_v42  ;;  %v1022_v44 = vsub.f32 %v1004_v33, %v1017_v43 }
 0x74f   : > { %v1026_v48 = vmul.f32 1.442695, %v1022_v44 }
 0x750   : > { %v1020_v49 = vpop.xlane.xlu0 %1019 }
 0x751   : > { %3198 = vpow2.f32 %v1026_v48  ;;  %v1023_v50 = vsub.f32 %v1009_v37, %v1020_v49  ;;  %v1166_v37 = vsub.s32 2, %v3509_v45 }
 0x753   : > { %v1028_v52 = vmul.f32 1.442695, %v1023_v50  ;;  %v1167_v38 = vrot.slane %v3515_v47, %v1166_v37 }
 0x755   : > { %3200 = vpow2.f32 %v1028_v52 }
 0x757   : > { %v3197_v53 = vpop.eup %3196 }
 0x758   : > { %v1030_v54 = vsel %vm776_vm6, %v3197_v53, 0.0 }
 0x759   : > { %1031 = vadd.xlane.f32.xlu0 %v1030_v54 }
 0x75b   : > { %v3199_v55 = vpop.eup %3198 }
 0x75c   : > { %v1033_v56 = vsel %vm776_vm6, %v3199_v55, 0.0 }
 0x75d   : > { %1034 = vadd.xlane.f32.xlu1 %v1033_v56 }
 0x75f   : > { %v3201_v57 = vpop.eup %3200 }
 0x760   : > { %v1036_v58 = vsel %vm776_vm6, %v3201_v57, 0.0 }
 0x761   : > { %1037 = vadd.xlane.f32.xlu0 %v1036_v58 }
 0x76e   : > { %3117 = vrot.lane.b32.xlu1 %v3541_v12, %s4008_s14 }
 0x777   : > { %1049 = vrot.lane.b32.xlu0 %v3531_v4, %s4008_s14  ;;  %s3268_s14 = scalar_lea.vmem %s3949_s22, 16 }
 0x778   : > { %p3269_p11 = scmp.ne.s32.totalorder %s3949_s22, %s3268_s14 }
 0x77a   : > { %p3270_p12 = pnand %p3269_p11, %p3451_p5 }
 0x77c   : > { %p3271_p13 = pneg %p3270_p12 }
 0x7e6   : > { %v1032_v59 = vpop.xlane.xlu0 %1031 }
 0x7e7   : > { %3202 = vrcp.f32 %v1032_v59 }
 0x7ea   : > { %v1035_v60 = vpop.xlane.xlu1 %1034 }
 0x7eb   : > { %3204 = vrcp.f32 %v1035_v60 }
 0x7ee   : > { %v3118_v61 = vpop.permute.xlu1 %3117  ;;  %v1038_v62 = vpop.xlane.xlu0 %1037 }
 0x7ef   : > { %v3120_v63 = vunpack.i.h.bf16 %v3118_v61  ;;  %v3119_v0 = vunpack.i.l.bf16 %v3118_v61  ;;  %3206 = vrcp.f32 %v1038_v62 }
 0x7f1   : > { %v3035_v1 = vpack.c.bf16 %v3120_v63, %v3119_v0  ;;  %v3203_v3 = vpop.eup %3202 }
 0x7f2   : > { %v1042_v5 = vmul.f32 %v3203_v3, %v3197_v53  ;;  %v1050_v6 = vpop.permute.xlu0 %1049  ;;  %v3161_v3 = vld [vmem:[%s3996_s7 + $0x8] sm:$0xff]  }
 0x7f3   : > { %3036 = vmatpush3.bf16.msra.mxu1 %v3035_v1  ;;  %v3160_v1 = vld [vmem:[%s3996_s7] sm:$0xff]  }
 0x7f4   : > { %2880 = vmatprep.subr.mxu1 %v3335_v13 }
 0x7f5   : > { %v3205_v12 = vpop.eup %3204 }
 0x7f6   : > { %v1043_v4 = vmul.f32 %v3205_v12, %v3199_v55 }
 0x7f7   : > { %2881 = vmatpush3.msra.mxu1 %v1050_v6 }
 0x7f8   : > { %2883 = vmatmul.mubr.msk.f32.vlgmr.msra.gmra.mrb[10].mxu1 %vm776_vm6, %v1042_v5  ;;  %2899 = vmatprep.subr.bf16.mxu1 %v3160_v1 }
 0x7f9   : > { %2885 = vmatprep.mubr.msk.f32.mxu1 %vm3334_vm2, %v3335_v13  ;;  %v3207_v7 = vpop.eup %3206  ;;  %2900 = vmatpush3.bf16.msra.mxu1 %v3160_v1 }
 0x7fa   : > { %v1044_v9 = vmul.f32 %v3207_v7, %v3201_v57  ;;  %2901 = vmatprep.subr.bf16.mxu1 %v3161_v3 }
 0x7fc   : > { %2886 = vmatmul.mubr.msk.f32.gmra.mrb[12].mxu1 %vm776_vm6, %v1043_v4 }
 0x7fd   : > { %2888 = vmatprep.mubr.msk.f32.mxu1 %vm3334_vm2, %v3335_v13  ;;  %2902 = vmatpush3.bf16.msra.mxu1 %v3161_v3 }
 0x800   : > { %2889 = vmatmul.mubr.msk.f32.gmra.mrb[14].mxu1 %vm776_vm6, %v1044_v9 }
 0x8cb   : > { %v1129_v16 = vpop.f32.mrb[10].mxu1 }
 0x8cc   : > { %v2884_v17 = vpop.f32.mrb[11].mxu1 }
 0x8cd   : > { %v1278_v17 = vsub.s32 3, %v3509_v45 }
 0x8cf   : > { %v1134_v19 = vpop.f32.mrb[12].mxu1 }
 0x8d0   : > { %v3121_v20 = vpack.i.bf16 %v1134_v19, %v1129_v16  ;;  %v2887_v22 = vpop.f32.mrb[13].mxu1  ;;  %v1279_v19 = vrot.slane %v3515_v47, %v1278_v17 }
 0x8d2   : > { %3122 = vrot.lane.b32.xlu1 %v3121_v20, %s4006_s21  ;;  %v1285_v20 = vsub.s32 4, %v3509_v45 }
 0x8d3   : > { %v1139_v25 = vpop.f32.mrb[14].mxu1 }
 0x8d4   : > { %v2890_v27 = vpop.f32.mrb[15].mxu1 }
 0x8d6   : > { %1150 = vrot.lane.b32.xlu1 %v1139_v25, %s4006_s21  ;;  %s3272_s21 = sshll.u32 %s3342_s29, 4  ;;  %s3273_s21 = int_to_ptr.vmem [resolvable:$false] %s3272_s21 }
 0x8d7   : > { %p3275_p0 = scmp.lt.s32.totalorder %s3949_s22, %s3273_s21 }
 0x944   : > { %v3123_v28 = vpop.permute.xlu1 %3122 }
 0x945   : > { %v3125_v29 = vunpack.i.h.bf16 %v3123_v28  ;;  %v3124_v30 = vunpack.i.l.bf16 %v3123_v28 }
 0x947   : > { %v1156_v31 = vsel %vm683_vm3, %v3622_v24, %v3125_v29  ;;  %v1155_v32 = vsel %vm683_vm3, %v3620_v21, %v3124_v30  ;;  %v1286_v30 = vrot.slane %v3515_v47, %v1285_v20 }
 0x948   : > { %v1158_v33 = vpack.c.bf16 %v1156_v31, %v1155_v32  ;;  %v1151_v34 = vpop.permute.xlu1 %1150 }
 0x949   : > { %v1157_v35 = vsel %vm683_vm3, %v3624_v26, %v1151_v34 }
 0x94a   : > { %v1159_v36 = vpack.c.bf16 %v1157_v35, %v1157_v35  ;;  %2895 = vmatprep.mubr.msk.bf16.mxu0 %vm540_vm1, %v1158_v33 }
 0x94c   : > { %2896 = vmatmul.mubr.msk.bf16.vlgmr.msra.gmra.mrb[16].mxu0 %vm540_vm1, %v1159_v36 }
 0xa1f   : > { %v2897_v24 = vpop.f32.mrb[16].mxu0 }
 0xa20   : > { %v1220_v39 = vpop.f32.mrb[17].mxu0  ;;  %v1229_v42 = vadd.f32 %v2897_v24, %v1167_v38 }
 0xa21   : > { %v1221_v40 = vadd.f32 %v1220_v39, %v1167_v38  ;;  %v2898_v21 = vpop.f32.mrb[18].mxu0 }
 0xa22   : > { %v1223_v41 = vpop.f32.mrb[19].mxu0  ;;  %v3676_v49 = vadd.f32 %v1229_v42, %v3481_v8  ;;  %v3163_v21 = vld [vmem:[%s3998_s9 + $0x8] sm:$0xff]   ;;  %v3165_v42 = vld [vmem:[%s3998_s9 + $0x18] sm:$0xff]  }
 0xa23   : > { %v3668_v43 = vadd.f32 %v1221_v40, %v3486_v11  ;;  %v1224_v26 = vadd.f32 %v1223_v41, %v1167_v38  ;;  %v3162_v40 = vld [vmem:[%s3998_s9] sm:$0xff]   ;;  %v3164_v41 = vld [vmem:[%s3998_s9 + $0x10] sm:$0xff]  }
 0xa24   : > { %v1243_v52 = vsel %vm540_vm1, %v3676_v49, 0.0  ;;  %2907 = vmatprep.subr.bf16.mxu0 %v3162_v40 }
 0xa25   : > { %v3671_v44 = vadd.f32 %v1224_v26, %v3490_v15  ;;  %v1237_v48 = vsel %vm540_vm1, %v3668_v43, 0.0  ;;  %2908 = vmatpush3.bf16.msra.mxu0 %v3162_v40  ;;  %v2642_v26 = vld [vmem:[%s3997_s8] ss:$0 sm:$0xff] }
 0xa26   : > { %1238 = vadd.xlane.f32.xlu1 %v1237_v48  ;;  %2909 = vmatprep.subr.bf16.mxu0 %v3163_v21 }
 0xa27   : > { %v1240_v50 = vsel %vm540_vm1, %v3671_v44, 0.0 }
 0xa28   : > { %1241 = vadd.xlane.f32.xlu0 %v1240_v50 }
 0xa29   : > { %2910 = vmatpush3.bf16.msra.mxu0 %v3163_v21 }
 0xa2a   : > { %2911 = vmatprep.subr.bf16.mxu0 %v3164_v41 }
 0xa2c   : > { %1244 = vadd.xlane.f32.xlu0 %v1243_v52 }
 0xa2d   : > { %2912 = vmatpush3.bf16.msra.mxu0 %v3164_v41 }
 0xa2e   : > { %2913 = vmatprep.subr.bf16.mxu0 %v3165_v42 }
 0xa31   : > { %2914 = vmatpush3.bf16.msra.mxu0 %v3165_v42 }
 0xa32   : > { %3041 = vmatprep.subr.bf16.mxu0 %v3332_v2 }
 0xab3   : > { %v1239_v11 = vpop.xlane.xlu1 %1238 }
 0xab4   : > { %v1246_v53 = vmul.f32 0.03125, %v1239_v11 }
 0xab5   : > { %v1242_v54 = vpop.xlane.xlu0 %1241 }
 0xab6   : > { %v1249_v15 = vsub.f32 %v3668_v43, %v1246_v53  ;;  %v1247_v55 = vmul.f32 0.03125, %v1242_v54 }
 0xab8   : > { %v1250_v56 = vsub.f32 %v3671_v44, %v1247_v55  ;;  %v1252_v57 = vmul.f32 %v1249_v15, %v1249_v15 }
 0xab9   : > { %v1245_v58 = vpop.xlane.xlu0 %1244 }
 0xaba   : > { %v1248_v8 = vmul.f32 0.03125, %v1245_v58  ;;  %v1255_v59 = vsel %vm540_vm1, %v1252_v57, 0.0  ;;  %v1253_v60 = vmul.f32 %v1250_v56, %v1250_v56 }
 0xabb   : > { %1256 = vadd.xlane.f32.xlu0 %v1255_v59 }
 0xabc   : > { %v1251_v61 = vsub.f32 %v3676_v49, %v1248_v8  ;;  %v1258_v62 = vsel %vm540_vm1, %v1253_v60, 0.0 }
 0xabd   : > { %1259 = vadd.xlane.f32.xlu1 %v1258_v62 }
 0xabe   : > { %v1254_v63 = vmul.f32 %v1251_v61, %v1251_v61 }
 0xac0   : > { %v1261_v0 = vsel %vm540_vm1, %v1254_v63, 0.0 }
 0xac1   : > { %1262 = vadd.xlane.f32.xlu0 %v1261_v0 }
 0xb48   : > { %v1257_v5 = vpop.xlane.xlu0 %1256 }
 0xb49   : > { %v1264_v6 = vmul.f32 0.03125, %v1257_v5 }
 0xb4a   : > { %v1260_v12 = vpop.xlane.xlu1 %1259 }
 0xb4b   : > { %v1267_v4 = vadd.f32 1e-12, %v1264_v6  ;;  %v1265_v7 = vmul.f32 0.03125, %v1260_v12 }
 0xb4d   : > { %3208 = vrsqrt.f32 %v1267_v4  ;;  %v1268_v9 = vadd.f32 1e-12, %v1265_v7 }
 0xb4e   : > { %v1263_v10 = vpop.xlane.xlu0 %1262 }
 0xb4f   : > { %3210 = vrsqrt.f32 %v1268_v9  ;;  %v1266_v14 = vmul.f32 0.03125, %v1263_v10 }
 0xb51   : > { %v1269_v16 = vadd.f32 1e-12, %v1266_v14 }
 0xb53   : > { %3212 = vrsqrt.f32 %v1269_v16 }
 0xb57   : > { %v3209_v22 = vpop.eup %3208 }
 0xb58   : > { %v1273_v25 = vmul.f32 %v3209_v22, %v1249_v15 }
 0xb59   : > { %v3211_v27 = vpop.eup %3210 }
 0xb5a   : > { %v1274_v28 = vmul.f32 %v3211_v27, %v1250_v56  ;;  %v1280_v29 = vmul.f32 %v1279_v19, %v1273_v25 }
 0xb5c   : > { %v1281_v31 = vmul.f32 %v1279_v19, %v1274_v28  ;;  %v1287_v34 = vadd.f32 %v1286_v30, %v1280_v29 }
 0xb5d   : > { %v3213_v32 = vpop.eup %3212 }
 0xb5e   : > { %v1275_v33 = vmul.f32 %v3213_v32, %v1251_v61  ;;  %v1288_v35 = vadd.f32 %v1286_v30, %v1281_v31  ;;  %v1490_v31 = vsub.s32 5, %v3509_v45  ;;  %v3176_v45 = vld [vmem:[%s4000_s11] sm:$0xff]  }
 0xb60   : > { %v1282_v36 = vmul.f32 %v1279_v19, %v1275_v33  ;;  %v1290_v38 = vpack.c.bf16 %v1288_v35, %v1287_v34  ;;  %v1491_v33 = vrot.slane %v3515_v47, %v1490_v31 }
 0xb62   : > { %2903 = vmatprep.mubr.msk.bf16.mxu1 %vm540_vm1, %v1290_v38  ;;  %v1289_v24 = vadd.f32 %v1286_v30, %v1282_v36 }
 0xb64   : > { %v1291_v39 = vpack.c.bf16 %v1289_v24, %v1289_v24 }
 0xb66   : > { %2904 = vmatmul.mubr.msk.bf16.vlgmr.msra.gmra.mrb[16].mxu1 %vm540_vm1, %v1291_v39 }
 0xc39   : > { %v2905_v48 = vpop.f32.mrb[16].mxu1 }
 0xc3a   : > { %v1364_v50 = vadd.f32 %v2905_v48, %v2642_v26  ;;  %v1355_v52 = vpop.f32.mrb[17].mxu1 }
 0xc3b   : > { %v1356_v11 = vadd.f32 %v2642_v26, %v1355_v52  ;;  %v2906_v53 = vpop.f32.mrb[18].mxu1 }
 0xc3c   : > { %v1371_v54 = vmul.f32 %v1364_v50, %v1364_v50  ;;  %v1358_v15 = vpop.f32.mrb[19].mxu1 }
 0xc3d   : > { %v1369_v55 = vmul.f32 %v1356_v11, %v1356_v11  ;;  %v1359_v56 = vadd.f32 %v2642_v26, %v1358_v15 }
 0xc3e   : > { %v1374_v57 = vmul.f32 %v1371_v54, %v1364_v50 }
 0xc3f   : > { %v1372_v58 = vmul.f32 %v1369_v55, %v1356_v11  ;;  %v1370_v8 = vmul.f32 %v1359_v56, %v1359_v56 }
 0xc40   : > { %v1377_v59 = vmul.f32 0.044715, %v1374_v57 }
 0xc41   : > { %v1375_v60 = vmul.f32 0.044715, %v1372_v58  ;;  %v1373_v61 = vmul.f32 %v1370_v8, %v1359_v56 }
 0xc42   : > { %v1380_v62 = vadd.f32 %v1377_v59, %v1364_v50  ;;  %v3166_v59 = vld [vmem:[%s3992_s3 + $0x10] sm:$0xff]  }
 0xc43   : > { %v1378_v63 = vadd.f32 %v1375_v60, %v1356_v11  ;;  %v1376_v0 = vmul.f32 0.044715, %v1373_v61  ;;  %2919 = vmatprep.subr.bf16.mxu1 %v3166_v59  ;;  %v3167_v60 = vld [vmem:[%s3992_s3 + $0x18] sm:$0xff]  }
 0xc44   : > { %v1383_v1 = vmul.f32 0.7978846, %v1380_v62  ;;  %2920 = vmatpush3.bf16.msra.mxu1 %v3166_v59 }
 0xc45   : > { %v1381_v3 = vmul.f32 0.7978846, %v1378_v63  ;;  %v1379_v5 = vadd.f32 %v1376_v0, %v1359_v56  ;;  %2921 = vmatprep.subr.bf16.mxu1 %v3167_v60 }
 0xc46   : > { %3214 = vtanh.f32 %v1383_v1 }
 0xc47   : > { %3216 = vtanh.f32 %v1381_v3  ;;  %v1382_v6 = vmul.f32 0.7978846, %v1379_v5 }
 0xc48   : > { %2922 = vmatpush3.bf16.msra.mxu1 %v3167_v60 }
 0xc49   : > { %3218 = vtanh.f32 %v1382_v6  ;;  %3037 = vmatprep.subr.bf16.mxu1 %v3332_v2 }
 0xc50   : > { %v3215_v12 = vpop.eup %3214 }
 0xc51   : > { %v3217_v4 = vpop.eup %3216  ;;  %v1389_v7 = vadd.f32 1.0, %v3215_v12 }
 0xc52   : > { %v1387_v9 = vadd.f32 1.0, %v3217_v4  ;;  %v3759_v4 = vld [vmem:[%s3995_s6 + $0x8] sm:$0x3f] }
 0xc53   : > { %v3219_v10 = vpop.eup %3218  ;;  %v1392_v14 = vmul.f32 0.5, %v1389_v7  ;;  %v1539_v7 = vrot.slane %v3759_v4, %v583_v46 }
 0xc54   : > { %v1390_v16 = vmul.f32 0.5, %v1387_v9  ;;  %v1388_v19 = vadd.f32 1.0, %v3219_v10  ;;  %v1546_v10 = vrot.slane %v3759_v4, %v590_v51  ;;  %v2659_v51 = vld [vmem:[%s3993_s4 + $0x1] ss:$0 sm:$0xff] }
 0xc55   : > { %v1395_v25 = vmul.f32 %v1392_v14, %v1364_v50 }
 0xc56   : > { %v1391_v22 = vmul.f32 0.5, %v1388_v19  ;;  %v1393_v27 = vmul.f32 %v1390_v16, %v1356_v11 }
 0xc57   : > { %v1397_v30 = vpack.c.bf16 %v1395_v25, %v1395_v25 }
 0xc58   : > { %v1394_v28 = vmul.f32 %v1391_v22, %v1359_v56 }
 0xc5a   : > { %v1396_v29 = vpack.c.bf16 %v1394_v28, %v1393_v27 }
 0xc5c   : > { %2915 = vmatprep.mubr.msk.bf16.mxu0 %vm1430_vm7, %v1396_v29 }
 0xc5d   : > { %2916 = vmatmul.mubr.msk.bf16.vlgmr.msra.gmra.mrb[20].mxu0 %vm1430_vm7, %v1397_v30 }
 0xc5e   : > { %2948 = vmatprep.mubr.msk.f32.mxu0 %vm3334_vm2, %v3335_v13 }
 0xd30   : > { %v2917_v32 = vpop.f32.mrb[20].mxu0 }
 0xd31   : > { %v1471_v34 = vpop.f32.mrb[21].mxu0  ;;  %v1487_v35 = vadd.f32 %v2917_v32, %v3676_v49 }
 0xd32   : > { %v1485_v36 = vadd.f32 %v1471_v34, %v3668_v43  ;;  %v2918_v38 = vpop.f32.mrb[22].mxu0 }
 0xd33   : > { %v1474_v24 = vpop.f32.mrb[23].mxu0  ;;  %v3733_v21 = vadd.f32 %v1491_v33, %v1487_v35 }
 0xd34   : > { %v3730_v39 = vadd.f32 %v1491_v33, %v1485_v36  ;;  %v1486_v40 = vadd.f32 %v1474_v24, %v3671_v44 }
 0xd35   : > { %v1503_v43 = vsel %vm540_vm1, %v3733_v21, 0.0 }
 0xd36   : > { %v3735_v41 = vadd.f32 %v1491_v33, %v1486_v40  ;;  %v1497_v42 = vsel %vm540_vm1, %v3730_v39, 0.0 }
 0xd37   : > { %1498 = vadd.xlane.f32.xlu1 %v1497_v42 }
 0xd38   : > { %v1500_v47 = vsel %vm540_vm1, %v3735_v41, 0.0 }
 0xd39   : > { %1501 = vadd.xlane.f32.xlu0 %v1500_v47 }
 0xd3b   : > { %1504 = vadd.xlane.f32.xlu1 %v1503_v43 }
 0xdc4   : > { %v1499_v49 = vpop.xlane.xlu1 %1498 }
 0xdc5   : > { %v1506_v26 = vmul.f32 0.03125, %v1499_v49 }
 0xdc6   : > { %v1502_v48 = vpop.xlane.xlu0 %1501 }
 0xdc7   : > { %v1509_v44 = vsub.f32 %v3730_v39, %v1506_v26  ;;  %v1507_v50 = vmul.f32 0.03125, %v1502_v48 }
 0xdc8   : > { %v1505_v52 = vpop.xlane.xlu1 %1504 }
 0xdc9   : > { %v1510_v11 = vsub.f32 %v3735_v41, %v1507_v50  ;;  %v1508_v53 = vmul.f32 0.03125, %v1505_v52  ;;  %v1512_v54 = vmul.f32 %v1509_v44, %v1509_v44 }
 0xdcb   : > { %v1511_v15 = vsub.f32 %v3733_v21, %v1508_v53  ;;  %v1515_v55 = vsel %vm540_vm1, %v1512_v54, 0.0  ;;  %v1513_v56 = vmul.f32 %v1510_v11, %v1510_v11 }
 0xdcc   : > { %1516 = vadd.xlane.f32.xlu0 %v1515_v55 }
 0xdcd   : > { %v1518_v57 = vsel %vm540_vm1, %v1513_v56, 0.0  ;;  %v1514_v58 = vmul.f32 %v1511_v15, %v1511_v15 }
 0xdce   : > { %1519 = vadd.xlane.f32.xlu1 %v1518_v57 }
 0xdcf   : > { %v1521_v8 = vsel %vm540_vm1, %v1514_v58, 0.0 }
 0xdd0   : > { %1522 = vadd.xlane.f32.xlu0 %v1521_v8 }
 0xe59   : > { %v1517_v61 = vpop.xlane.xlu0 %1516 }
 0xe5a   : > { %v1524_v62 = vmul.f32 0.03125, %v1517_v61 }
 0xe5b   : > { %v1520_v63 = vpop.xlane.xlu1 %1519 }
 0xe5c   : > { %v1527_v0 = vadd.f32 1e-12, %v1524_v62  ;;  %v1525_v1 = vmul.f32 0.03125, %v1520_v63 }
 0xe5d   : > { %v1523_v3 = vpop.xlane.xlu0 %1522 }
 0xe5e   : > { %3220 = vrsqrt.f32 %v1527_v0  ;;  %v1528_v5 = vadd.f32 1e-12, %v1525_v1  ;;  %v1526_v6 = vmul.f32 0.03125, %v1523_v3 }
 0xe60   : > { %3222 = vrsqrt.f32 %v1528_v5  ;;  %v1529_v12 = vadd.f32 1e-12, %v1526_v6 }
 0xe62   : > { %3224 = vrsqrt.f32 %v1529_v12 }
 0xe68   : > { %v3221_v9 = vpop.eup %3220 }
 0xe69   : > { %v1533_v14 = vmul.f32 %v3221_v9, %v1509_v44 }
 0xe6a   : > { %v3223_v16 = vpop.eup %3222 }
 0xe6b   : > { %v1534_v19 = vmul.f32 %v3223_v16, %v1510_v11  ;;  %v1540_v22 = vmul.f32 %v1539_v7, %v1533_v14 }
 0xe6c   : > { %v3225_v25 = vpop.eup %3224 }
 0xe6d   : > { %v1535_v27 = vmul.f32 %v3225_v25, %v1511_v15  ;;  %v1541_v28 = vmul.f32 %v1539_v7, %v1534_v19  ;;  %v1547_v29 = vadd.f32 %v1546_v10, %v1540_v22 }
 0xe6f   : > { %v1548_v30 = vadd.f32 %v1546_v10, %v1541_v28  ;;  %v1542_v32 = vmul.f32 %v1539_v7, %v1535_v27 }
 0xe71   : > { %v1550_v33 = vpack.c.bf16 %v1548_v30, %v1547_v29  ;;  %v1549_v34 = vadd.f32 %v1546_v10, %v1542_v32 }
 0xe73   : > { %2923 = vmatprep.mubr.msk.bf16.mxu1 %vm540_vm1, %v1550_v33  ;;  %v1551_v46 = vpack.c.bf16 %v1549_v34, %v1549_v34 }
 0xe75   : > { %2924 = vmatmul.mubr.msk.bf16.vlgmr.msra.gmra.mrb[20].mxu1 %vm540_vm1, %v1551_v46 }
 0xe76   : > { %2933 = vmatprep.mubr.msk.f32.mxu1 %vm3334_vm2, %v3335_v13 }
 0xf48   : > { %v2925_v35 = vpop.f32.mrb[20].mxu1 }
 0xf49   : > { %v3774_v36 = vadd.f32 %v2925_v35, %v2659_v51  ;;  %v1617_v38 = vpop.f32.mrb[21].mxu1 }
 0xf4a   : > { %v2926_v24 = vpop.f32.mrb[22].mxu1  ;;  %v1618_v42 = vadd.f32 %v2659_v51, %v1617_v38 }
 0xf4b   : > { %1638 = vrot.lane.b32.xlu0 %v3774_v36, %s3333_s23  ;;  %v1620_v40 = vpop.f32.mrb[23].mxu1 }
 0xf4c   : > { %v1621_v47 = vadd.f32 %v2659_v51, %v1620_v40 }
 0xf4e   : > { %v3778_v43 = vpack.i.bf16 %v1621_v47, %v1618_v42 }
 0xf4f   : > { %1865 = vrot.lane.b32.xlu0 %v1621_v47, %s3339_s27 }
 0xf50   : > { %3127 = vrot.lane.b32.xlu1 %v3778_v43, %s3333_s23  ;;  %s4019_s23 = smov 64  }
 0xf54   : > { %3132 = vrot.lane.b32.xlu1 %v3778_v43, %s3338_s24 }
 0xf58   : > { %1873 = vrot.lane.b32.xlu1 %v3774_v36, %s3338_s24  ;;  %s4020_s24 = smov 48  }
 0xf5c   : > { %1863 = vrot.lane.b32.xlu1 %v1618_v42, %s3339_s27 }
 0xf60   : > { %1867 = vrot.lane.b32.xlu1 %v3774_v36, %s3339_s27  ;;  %s3947_s27 = scalar_lea.hbm %s4002_s13, %s2718_s16 }
 0xfbd   : > { %v1639_v53 = vpop.permute.xlu0 %1638 }
 0xfc1   : > { %v1866_v55 = vpop.permute.xlu0 %1865 }
 0xfc2   : > { %v3128_v49 = vpop.permute.xlu1 %3127 }
 0xfc3   : > { %v3130_v26 = vunpack.i.h.bf16 %v3128_v49  ;;  %v3129_v48 = vunpack.i.l.bf16 %v3128_v49 }
 0xfc5   : > { %v3038_v44 = vpack.c.bf16 %v3130_v26, %v3129_v48 }
 0xfc6   : > { %v3133_v50 = vpop.permute.xlu1 %3132 }
 0xfc7   : > { %3040 = vmatpush3.bf16.xpose.msk.msra.mxu1 %vm3551_vm4, %v3038_v44  ;;  %v3135_v52 = vunpack.i.h.bf16 %v3133_v50  ;;  %v3134_v11 = vunpack.i.l.bf16 %v3133_v50 }
 0xfc8   : > { %2931 = vmatprep.subr.mxu1 %v3335_v13 }
 0xfc9   : > { %v3045_v54 = vpack.c.bf16 %v3135_v52, %v3134_v11 }
 0xfca   : > { %v1874_v15 = vpop.permute.xlu1 %1873 }
 0xfce   : > { %v1864_v18 = vpop.permute.xlu1 %1863 }
 0xfcf   : > { %2932 = vmatpush3.xpose.msk.msra.mxu1 %vm683_vm3, %v1639_v53 }
 0xfd0   : > { %3044 = vmatprep.subr.bf16.mxu1 %v3332_v2 }
 0xfd2   : > { %2934 = vmatmul.mubr.msk.f32.vlgmr.msra.gmra.mrb[24].mxu1 %vm683_vm3, %v1618_v42  ;;  %v1868_v56 = vpop.permute.xlu1 %1867 }
 0xfd3   : > { %3047 = vmatpush3.bf16.xpose.msk.msra.mxu1 %vm3551_vm4, %v3045_v54  ;;  %2936 = vmatprep.mubr.msk.f32.mxu1 %vm3334_vm2, %v3335_v13 }
 0xfd4   : > { %2961 = vmatprep.subr.mxu1 %v3335_v13 }
 0xfd6   : > { %2937 = vmatmul.mubr.msk.f32.gmra.mrb[26].mxu1 %vm683_vm3, %v1621_v47 }
 0xfd7   : > { %2939 = vmatprep.mubr.msk.f32.mxu1 %vm3334_vm2, %v3335_v13 }
 0xfda   : > { %2940 = vmatmul.mubr.msk.f32.gmra.mrb[28].mxu1 %vm683_vm3, %v3774_v36 }
 0xfdb   : > { %2962 = vmatpush3.xpose.msk.msra.mxu1 %vm683_vm3, %v1874_v15  ;;  %2963 = vmatprep.mubr.msk.f32.mxu1 %vm3334_vm2, %v3335_v13 }
 0xfde   : > { %2964 = vmatmul.mubr.msk.f32.vlgmr.msra.gmra.mrb[30].mxu1 %vm683_vm3, %v1864_v18 }
 0xfdf   : > { %2966 = vmatprep.mubr.msk.f32.mxu1 %vm3334_vm2, %v3335_v13 }
 0xfe2   : > { %2967 = vmatmul.mubr.msk.f32.gmra.mrb[32].mxu1 %vm683_vm3, %v1866_v55 }
 0xfe3   : > { %2969 = vmatprep.mubr.msk.f32.mxu1 %vm3334_vm2, %v3335_v13 }
 0xfe6   : > { %2970 = vmatmul.mubr.msk.f32.gmra.mrb[34].mxu1 %vm683_vm3, %v1868_v56 }
0x10a5   : > { %v1718_v57 = vpop.f32.mrb[24].mxu1 }
0x10a6   : > { %v1719_v58 = vadd.f32 %v1718_v57, %v3573_v23  ;;  %v2935_v8 = vpop.f32.mrb[25].mxu1 }
0x10a8   : > { %v1732_v59 = vsel %vm776_vm6, %v1719_v58, -inf }
0x10a9   : > { %1733 = vmax.xlane.f32.xlu0 %v1732_v59  ;;  %v1723_v60 = vpop.f32.mrb[26].mxu1 }
0x10aa   : > { %v1724_v61 = vadd.f32 %v1723_v60, %v3573_v23  ;;  %v2938_v62 = vpop.f32.mrb[27].mxu1 }
0x10ac   : > { %v1735_v63 = vsel %vm776_vm6, %v1724_v61, -inf }
0x10ad   : > { %1736 = vmax.xlane.f32.xlu1 %v1735_v63  ;;  %v1728_v0 = vpop.f32.mrb[28].mxu1 }
0x10ae   : > { %v1729_v1 = vadd.f32 %v1728_v0, %v3573_v23  ;;  %v2941_v3 = vpop.f32.mrb[29].mxu1 }
0x10b0   : > { %v1738_v5 = vsel %vm776_vm6, %v1729_v1, -inf }
0x10b1   : > { %1739 = vmax.xlane.f32.xlu0 %v1738_v5  ;;  %v1953_v6 = vpop.f32.mrb[30].mxu1 }
0x10b2   : > { %v1954_v12 = vadd.f32 %v1953_v6, %v3573_v23  ;;  %v2965_v7 = vpop.f32.mrb[31].mxu1 }
0x10b4   : > { %v1967_v9 = vsel %vm776_vm6, %v1954_v12, -inf }
0x10b5   : > { %1968 = vmax.xlane.f32.xlu0 %v1967_v9  ;;  %v1958_v10 = vpop.f32.mrb[32].mxu1 }
0x10b6   : > { %v1959_v14 = vadd.f32 %v1958_v10, %v3573_v23  ;;  %v2968_v16 = vpop.f32.mrb[33].mxu1 }
0x10b8   : > { %v1970_v19 = vsel %vm776_vm6, %v1959_v14, -inf }
0x10b9   : > { %1971 = vmax.xlane.f32.xlu0 %v1970_v19  ;;  %v1963_v22 = vpop.f32.mrb[34].mxu1 }
0x10ba   : > { %v1964_v25 = vadd.f32 %v1963_v22, %v3573_v23  ;;  %v2971_v27 = vpop.f32.mrb[35].mxu1 }
0x10bc   : > { %v1973_v28 = vsel %vm776_vm6, %v1964_v25, -inf }
0x10bd   : > { %1974 = vmax.xlane.f32.xlu1 %v1973_v28 }
0x10ce   : > { %3137 = vrot.lane.b32.xlu1 %v3778_v43, %s4019_s23 }
0x1136   : > { %v1734_v29 = vpop.xlane.xlu0 %1733 }
0x1137   : > { %v1741_v30 = vsub.f32 %v1719_v58, %v1734_v29 }
0x1139   : > { %v1744_v32 = vmul.f32 1.442695, %v1741_v30 }
0x113a   : > { %v1737_v33 = vpop.xlane.xlu1 %1736 }
0x113b   : > { %3226 = vpow2.f32 %v1744_v32  ;;  %v1742_v34 = vsub.f32 %v1724_v61, %v1737_v33 }
0x113d   : > { %v1746_v46 = vmul.f32 1.442695, %v1742_v34  ;;  %v3168_v34 = vld [vmem:[%s3994_s5 + $0x10] sm:$0xff]  }
0x113e   : > { %v1740_v51 = vpop.xlane.xlu0 %1739  ;;  %2987 = vmatprep.subr.bf16.mxu1 %v3168_v34 }
0x113f   : > { %3228 = vpow2.f32 %v1746_v46  ;;  %v1743_v35 = vsub.f32 %v1729_v1, %v1740_v51  ;;  %2988 = vmatpush3.bf16.msra.mxu1 %v3168_v34 }
0x1141   : > { %v1748_v38 = vmul.f32 1.442695, %v1743_v35 }
0x1142   : > { %v1969_v24 = vpop.xlane.xlu0 %1968 }
0x1143   : > { %3230 = vpow2.f32 %v1748_v38  ;;  %v1976_v23 = vsub.f32 %v1954_v12, %v1969_v24  ;;  %v3169_v24 = vld [vmem:[%s3994_s5 + $0x18] sm:$0xff]  }
0x1144   : > { %2989 = vmatprep.subr.bf16.mxu1 %v3169_v24 }
0x1145   : > { %v3227_v40 = vpop.eup %3226  ;;  %v1979_v42 = vmul.f32 1.442695, %v1976_v23  ;;  %2990 = vmatpush3.bf16.msra.mxu1 %v3169_v24 }
0x1146   : > { %v1972_v47 = vpop.xlane.xlu0 %1971  ;;  %v1750_v49 = vsel %vm776_vm6, %v3227_v40, 0.0 }
0x1147   : > { %3232 = vpow2.f32 %v1979_v42  ;;  %v1977_v26 = vsub.f32 %v1959_v14, %v1972_v47  ;;  %1751 = vadd.xlane.f32.xlu0 %v1750_v49 }
0x1149   : > { %v3229_v48 = vpop.eup %3228  ;;  %v1981_v44 = vmul.f32 1.442695, %v1977_v26 }
0x114a   : > { %v1975_v50 = vpop.xlane.xlu1 %1974  ;;  %v1753_v52 = vsel %vm776_vm6, %v3229_v48, 0.0 }
0x114b   : > { %3234 = vpow2.f32 %v1981_v44  ;;  %v1978_v11 = vsub.f32 %v1964_v25, %v1975_v50  ;;  %1754 = vadd.xlane.f32.xlu1 %v1753_v52 }
0x114d   : > { %v3231_v53 = vpop.eup %3230  ;;  %v1983_v54 = vmul.f32 1.442695, %v1978_v11 }
0x114e   : > { %v3138_v15 = vpop.permute.xlu1 %3137  ;;  %v1756_v18 = vsel %vm776_vm6, %v3231_v53, 0.0 }
0x114f   : > { %3236 = vpow2.f32 %v1983_v54  ;;  %v3140_v55 = vunpack.i.h.bf16 %v3138_v15  ;;  %v3139_v56 = vunpack.i.l.bf16 %v3138_v15  ;;  %1757 = vadd.xlane.f32.xlu0 %v1756_v18 }
0x1151   : > { %v3233_v57 = vpop.eup %3232  ;;  %v3042_v58 = vpack.c.bf16 %v3140_v55, %v3139_v56 }
0x1152   : > { %v1985_v8 = vsel %vm776_vm6, %v3233_v57, 0.0 }
0x1153   : > { %1986 = vadd.xlane.f32.xlu1 %v1985_v8  ;;  %3043 = vmatpush3.bf16.msra.mxu0 %v3042_v58  ;;  %v2123_v58 = vrot.slane %v3759_v4, %v1166_v37 }
0x1154   : > { %2946 = vmatprep.subr.mxu0 %v3335_v13 }
0x1155   : > { %v3235_v59 = vpop.eup %3234 }
0x1156   : > { %v1988_v60 = vsel %vm776_vm6, %v3235_v59, 0.0 }
0x1157   : > { %1989 = vadd.xlane.f32.xlu0 %v1988_v60 }
0x1159   : > { %v3237_v61 = vpop.eup %3236 }
0x115a   : > { %v1991_v62 = vsel %vm776_vm6, %v3237_v61, 0.0 }
0x115b   : > { %1992 = vadd.xlane.f32.xlu0 %v1991_v62 }
0x1164   : > { %3142 = vrot.lane.b32.xlu1 %v3778_v43, %s4020_s24 }
0x1168   : > { %2004 = vrot.lane.b32.xlu1 %v3774_v36, %s4020_s24 }
0x1171   : > { %1769 = vrot.lane.b32.xlu0 %v3774_v36, %s4019_s23 }
0x11d4   : > { %v1752_v63 = vpop.xlane.xlu0 %1751 }
0x11d5   : > { %3238 = vrcp.f32 %v1752_v63 }
0x11d8   : > { %v1755_v0 = vpop.xlane.xlu1 %1754 }
0x11d9   : > { %3240 = vrcp.f32 %v1755_v0 }
0x11dc   : > { %v1758_v1 = vpop.xlane.xlu0 %1757 }
0x11dd   : > { %3242 = vrcp.f32 %v1758_v1 }
0x11df   : > { %v3239_v7 = vpop.eup %3238 }
0x11e0   : > { %v1987_v3 = vpop.xlane.xlu1 %1986  ;;  %v1762_v43 = vmul.f32 %v3239_v7, %v3227_v40 }
0x11e1   : > { %3244 = vrcp.f32 %v1987_v3 }
0x11e3   : > { %v3241_v16 = vpop.eup %3240 }
0x11e4   : > { %v1990_v5 = vpop.xlane.xlu0 %1989  ;;  %v3143_v6 = vpop.permute.xlu1 %3142  ;;  %v1763_v36 = vmul.f32 %v3241_v16, %v3229_v48 }
0x11e5   : > { %v3145_v9 = vunpack.i.h.bf16 %v3143_v6  ;;  %v3144_v10 = vunpack.i.l.bf16 %v3143_v6  ;;  %3246 = vrcp.f32 %v1990_v5 }
0x11e7   : > { %v3049_v19 = vpack.c.bf16 %v3145_v9, %v3144_v10  ;;  %v3243_v22 = vpop.eup %3242 }
0x11e8   : > { %v1993_v12 = vpop.xlane.xlu0 %1992  ;;  %v2005_v25 = vpop.permute.xlu1 %2004  ;;  %v1764_v27 = vmul.f32 %v3243_v22, %v3231_v53 }
0x11e9   : > { %3248 = vrcp.f32 %v1993_v12 }
0x11eb   : > { %v3245_v28 = vpop.eup %3244 }
0x11ec   : > { %v1770_v14 = vpop.permute.xlu0 %1769 }
0x11ed   : > { %2947 = vmatpush3.msra.mxu0 %v1770_v14 }
0x11ee   : > { %2949 = vmatmul.mubr.msk.f32.vlgmr.msra.gmra.mrb[24].mxu0 %vm776_vm6, %v1762_v43  ;;  %3048 = vmatprep.subr.bf16.mxu0 %v3332_v2  ;;  %v1997_v2 = vmul.f32 %v3245_v28, %v3233_v57 }
0x11ef   : > { %3050 = vmatpush3.bf16.msra.mxu0 %v3049_v19  ;;  %2951 = vmatprep.mubr.msk.f32.mxu0 %vm3334_vm2, %v3335_v13  ;;  %v3247_v29 = vpop.eup %3246 }
0x11f0   : > { %2976 = vmatprep.subr.mxu0 %v3335_v13  ;;  %v1998_v30 = vmul.f32 %v3247_v29, %v3235_v59  ;;  %v3171_v29 = vld [vmem:[%s3996_s7 + $0x18] sm:$0xff]  }
0x11f2   : > { %2952 = vmatmul.mubr.msk.f32.gmra.mrb[26].mxu0 %vm776_vm6, %v1763_v36 }
0x11f3   : > { %2977 = vmatpush3.msra.mxu0 %v2005_v25  ;;  %2954 = vmatprep.mubr.msk.f32.mxu0 %vm3334_vm2, %v3335_v13  ;;  %v3249_v32 = vpop.eup %3248 }
0x11f4   : > { %v1999_v33 = vmul.f32 %v3249_v32, %v3237_v61 }
0x11f6   : > { %2955 = vmatmul.mubr.msk.f32.gmra.mrb[28].mxu0 %vm776_vm6, %v1764_v27 }
0x11f7   : > { %2978 = vmatprep.mubr.msk.f32.mxu0 %vm3334_vm2, %v3335_v13 }
0x11fa   : > { %2979 = vmatmul.mubr.msk.f32.vlgmr.msra.gmra.mrb[30].mxu0 %vm776_vm6, %v1997_v2  ;;  %v3170_v2 = vld [vmem:[%s3996_s7 + $0x10] sm:$0xff]  }
0x11fb   : > { %2981 = vmatprep.mubr.msk.f32.mxu0 %vm3334_vm2, %v3335_v13  ;;  %2995 = vmatprep.subr.bf16.mxu0 %v3170_v2 }
0x11fc   : > { %2996 = vmatpush3.bf16.msra.mxu0 %v3170_v2 }
0x11fd   : > { %2997 = vmatprep.subr.bf16.mxu0 %v3171_v29 }
0x11fe   : > { %2982 = vmatmul.mubr.msk.f32.gmra.mrb[32].mxu0 %vm776_vm6, %v1998_v30 }
0x11ff   : > { %2984 = vmatprep.mubr.msk.f32.mxu0 %vm3334_vm2, %v3335_v13 }
0x1200   : > { %2998 = vmatpush3.bf16.msra.mxu0 %v3171_v29 }
0x1201   : > { %3015 = vmatprep.subr.bf16.mxu0 %v3335_v13 }
0x1202   : > { %2985 = vmatmul.mubr.msk.f32.gmra.mrb[34].mxu0 %vm776_vm6, %v1999_v33 }
0x12c1   : > { %v1849_v46 = vpop.f32.mrb[24].mxu0 }
0x12c2   : > { %v2950_v51 = vpop.f32.mrb[25].mxu0 }
0x12c5   : > { %v1854_v35 = vpop.f32.mrb[26].mxu0 }
0x12c6   : > { %v2953_v38 = vpop.f32.mrb[27].mxu0 }
0x12c9   : > { %v1859_v23 = vpop.f32.mrb[28].mxu0 }
0x12ca   : > { %v2956_v40 = vpop.f32.mrb[29].mxu0 }
0x12cd   : > { %v2084_v42 = vpop.f32.mrb[30].mxu0 }
0x12ce   : > { %v2980_v47 = vpop.f32.mrb[31].mxu0 }
0x12d1   : > { %v2089_v49 = vpop.f32.mrb[32].mxu0 }
0x12d2   : > { %v3146_v26 = vpack.i.bf16 %v2089_v49, %v2084_v42  ;;  %v2983_v48 = vpop.f32.mrb[33].mxu0  ;;  %v2235_v42 = vrot.slane %v3759_v4, %v1278_v17  ;;  %v3172_v17 = vld [vmem:[%s3998_s9 + $0x20] sm:$0xff]  }
0x12d3   : > { %3003 = vmatprep.subr.bf16.mxu1 %v3172_v17 }
0x12d4   : > { %3147 = vrot.lane.b32.xlu1 %v3146_v26, %s4021_s30 }
0x12d5   : > { %v2094_v44 = vpop.f32.mrb[34].mxu0 }
0x12d6   : > { %v2986_v50 = vpop.f32.mrb[35].mxu0 }
0x12d7   : > { %v2242_v50 = vrot.slane %v3759_v4, %v1285_v20  ;;  %v3173_v20 = vld [vmem:[%s3998_s9 + $0x28] sm:$0xff]  }
0x12d8   : > { %2105 = vrot.lane.b32.xlu1 %v2094_v44, %s4021_s30  ;;  %s3274_s30 = scalar_lea.vmem %s3273_s21, 32 }
0x12d9   : > { %p3276_p1 = scmp.lt.s32.totalorder %s3274_s30, %s3268_s14 }
0x12db   : > { %p3277_p2 = por %p3276_p1, %p3275_p0 }
0x12dd   : > { %p3278_p3 = pnand %p3277_p2, %p3271_p13 }
0x1346   : > { %v3148_v52 = vpop.permute.xlu1 %3147 }
0x1347   : > { %v3150_v11 = vunpack.i.h.bf16 %v3148_v52  ;;  %v3149_v53 = vunpack.i.l.bf16 %v3148_v52 }
0x1349   : > { %v2111_v54 = vsel %vm683_vm3, %v1854_v35, %v3150_v11  ;;  %v2110_v15 = vsel %vm683_vm3, %v1849_v46, %v3149_v53 }
0x134a   : > { %v2113_v18 = vpack.c.bf16 %v2111_v54, %v2110_v15  ;;  %v2106_v55 = vpop.permute.xlu1 %2105 }
0x134b   : > { %v2112_v56 = vsel %vm683_vm3, %v1859_v23, %v2106_v55 }
0x134c   : > { %v2114_v57 = vpack.c.bf16 %v2112_v56, %v2112_v56  ;;  %2991 = vmatprep.mubr.msk.bf16.mxu1 %vm540_vm1, %v2113_v18  ;;  %v3174_v56 = vld [vmem:[%s3998_s9 + $0x30] sm:$0xff]  }
0x134e   : > { %2992 = vmatmul.mubr.msk.bf16.vlgmr.msra.gmra.mrb[36].mxu1 %vm540_vm1, %v2114_v57  ;;  %v3175_v57 = vld [vmem:[%s3998_s9 + $0x38] sm:$0xff]  }
0x134f   : > { %3004 = vmatpush3.bf16.msra.mxu1 %v3172_v17 }
0x1350   : > { %3005 = vmatprep.subr.bf16.mxu1 %v3173_v20 }
0x1353   : > { %3006 = vmatpush3.bf16.msra.mxu1 %v3173_v20 }
0x1354   : > { %3007 = vmatprep.subr.bf16.mxu1 %v3174_v56 }
0x1357   : > { %3008 = vmatpush3.bf16.msra.mxu1 %v3174_v56  ;;  %v2472_v56 = vld [vmem:[%s4001_s12] sm:$0x1] }
0x1358   : > { %3009 = vmatprep.subr.bf16.mxu1 %v3175_v57 }
0x135b   : > { %3010 = vmatpush3.bf16.msra.mxu1 %v3175_v57 }
0x1421   : > { %v2993_v8 = vpop.f32.mrb[36].mxu1 }
0x1422   : > { %v2176_v59 = vpop.f32.mrb[37].mxu1  ;;  %v2185_v60 = vadd.f32 %v2993_v8, %v2123_v58 }
0x1423   : > { %v2177_v61 = vadd.f32 %v2176_v59, %v2123_v58  ;;  %v2994_v62 = vpop.f32.mrb[38].mxu1 }
0x1424   : > { %v2179_v63 = vpop.f32.mrb[39].mxu1  ;;  %v2192_v6 = vadd.f32 %v2185_v60, %v3733_v21 }
0x1425   : > { %v3878_v0 = vadd.f32 %v2177_v61, %v3730_v39  ;;  %v2180_v1 = vadd.f32 %v2179_v63, %v2123_v58  ;;  %v2695_v58 = vld [vmem:[%s3997_s8 + $0x1] ss:$0 sm:$0xff] }
0x1426   : > { %v2199_v12 = vsel %vm540_vm1, %v2192_v6, 0.0 }
0x1427   : > { %v2193_v3 = vsel %vm540_vm1, %v3878_v0, 0.0  ;;  %v2191_v5 = vadd.f32 %v2180_v1, %v3735_v41 }
0x1428   : > { %2194 = vadd.xlane.f32.xlu0 %v2193_v3 }
0x1429   : > { %v2196_v37 = vsel %vm540_vm1, %v2191_v5, 0.0 }
0x142a   : > { %2197 = vadd.xlane.f32.xlu1 %v2196_v37 }
0x142c   : > { %2200 = vadd.xlane.f32.xlu0 %v2199_v12 }
0x14b5   : > { %v2195_v7 = vpop.xlane.xlu0 %2194 }
0x14b6   : > { %v2202_v9 = vmul.f32 0.03125, %v2195_v7 }
0x14b7   : > { %v2198_v10 = vpop.xlane.xlu1 %2197 }
0x14b8   : > { %v2205_v39 = vsub.f32 %v3878_v0, %v2202_v9  ;;  %v2203_v43 = vmul.f32 0.03125, %v2198_v10 }
0x14b9   : > { %v2201_v14 = vpop.xlane.xlu0 %2200 }
0x14ba   : > { %v2206_v16 = vsub.f32 %v2191_v5, %v2203_v43  ;;  %v2204_v19 = vmul.f32 0.03125, %v2201_v14  ;;  %v2208_v36 = vmul.f32 %v2205_v39, %v2205_v39 }
0x14bc   : > { %v2207_v41 = vsub.f32 %v2192_v6, %v2204_v19  ;;  %v2211_v21 = vsel %vm540_vm1, %v2208_v36, 0.0  ;;  %v2209_v22 = vmul.f32 %v2206_v16, %v2206_v16 }
0x14bd   : > { %2212 = vadd.xlane.f32.xlu0 %v2211_v21 }
0x14be   : > { %v2210_v25 = vmul.f32 %v2207_v41, %v2207_v41  ;;  %v2214_v27 = vsel %vm540_vm1, %v2209_v22, 0.0 }
0x14c0   : > { %v2217_v28 = vsel %vm540_vm1, %v2210_v25, 0.0 }
0x14c1   : > { %2215 = vadd.xlane.f32.xlu0 %v2214_v27  ;;  %2218 = vadd.xlane.f32.xlu1 %v2217_v28 }
0x154a   : > { %v2213_v30 = vpop.xlane.xlu0 %2212 }
0x154b   : > { %v2220_v32 = vmul.f32 0.03125, %v2213_v30 }
0x154d   : > { %v2223_v33 = vadd.f32 1e-12, %v2220_v32 }
0x154e   : > { %v2219_v34 = vpop.xlane.xlu1 %2218  ;;  %v2216_v46 = vpop.xlane.xlu0 %2215 }
0x154f   : > { %3250 = vrsqrt.f32 %v2223_v33  ;;  %v2222_v51 = vmul.f32 0.03125, %v2219_v34  ;;  %v2221_v35 = vmul.f32 0.03125, %v2216_v46 }
0x1551   : > { %v2225_v38 = vadd.f32 1e-12, %v2222_v51  ;;  %v2224_v24 = vadd.f32 1e-12, %v2221_v35 }
0x1553   : > { %3252 = vrsqrt.f32 %v2225_v38 }
0x1554   : > { %3254 = vrsqrt.f32 %v2224_v24  ;;  %v2445_v24 = vrot.slane %v3759_v4, %v1490_v31  ;;  %v3177_v31 = vld [vmem:[%s4000_s11 + $0x8] sm:$0xff]  }
0x1559   : > { %v3251_v23 = vpop.eup %3250 }
0x155a   : > { %v2229_v40 = vmul.f32 %v3251_v23, %v2205_v39 }
0x155c   : > { %v2236_v44 = vmul.f32 %v2235_v42, %v2229_v40 }
0x155d   : > { %v3253_v47 = vpop.eup %3252 }
0x155e   : > { %v3255_v49 = vpop.eup %3254  ;;  %v2231_v26 = vmul.f32 %v3253_v47, %v2207_v41  ;;  %v2243_v54 = vadd.f32 %v2242_v50, %v2236_v44 }
0x155f   : > { %v2230_v48 = vmul.f32 %v3255_v49, %v2206_v16 }
0x1560   : > { %v2238_v52 = vmul.f32 %v2235_v42, %v2231_v26 }
0x1561   : > { %v2237_v11 = vmul.f32 %v2235_v42, %v2230_v48 }
0x1562   : > { %v2245_v53 = vadd.f32 %v2242_v50, %v2238_v52 }
0x1563   : > { %v2244_v15 = vadd.f32 %v2242_v50, %v2237_v11 }
0x1564   : > { %v2247_v18 = vpack.c.bf16 %v2245_v53, %v2245_v53 }
0x1565   : > { %v2246_v55 = vpack.c.bf16 %v2244_v15, %v2243_v54  ;;  %v2447_v54 = vld [vmem:[%s3999_s10] sm:$0x3] }
0x1567   : > { %2999 = vmatprep.mubr.msk.bf16.mxu0 %vm540_vm1, %v2246_v55  ;;  %v2464_v55 = vrot.slane %v2447_v54, 1 }
0x1568   : > { %3000 = vmatmul.mubr.msk.bf16.vlgmr.msra.gmra.mrb[36].mxu0 %vm540_vm1, %v2247_v18 }
0x1569   : > { %3019 = vmatprep.mubr.msk.bf16.mxu0 %vm3334_vm2, %v3335_v13  ;;  %3016 = vmatpush3.bf16.msra.mxu0 %v3176_v45 }
0x156a   : > { %3017 = vmatprep.subr.bf16.mxu0 %v3335_v13 }
0x156d   : > { %3018 = vmatpush3.bf16.msra.mxu0 %v3177_v31 }
0x163b   : > { %v3001_v8 = vpop.f32.mrb[36].mxu0 }
0x163c   : > { %v2322_v59 = vadd.f32 %v3001_v8, %v2695_v58  ;;  %v2313_v60 = vpop.f32.mrb[37].mxu0 }
0x163d   : > { %v2314_v61 = vadd.f32 %v2695_v58, %v2313_v60  ;;  %v3002_v62 = vpop.f32.mrb[38].mxu0 }
0x163e   : > { %v2329_v63 = vmul.f32 %v2322_v59, %v2322_v59  ;;  %v2316_v1 = vpop.f32.mrb[39].mxu0 }
0x163f   : > { %v2327_v3 = vmul.f32 %v2314_v61, %v2314_v61  ;;  %v2317_v5 = vadd.f32 %v2695_v58, %v2316_v1 }
0x1640   : > { %v2332_v6 = vmul.f32 %v2329_v63, %v2322_v59 }
0x1641   : > { %v2330_v37 = vmul.f32 %v2327_v3, %v2314_v61  ;;  %v2328_v12 = vmul.f32 %v2317_v5, %v2317_v5 }
0x1642   : > { %v2335_v7 = vmul.f32 0.044715, %v2332_v6 }
0x1643   : > { %v2333_v9 = vmul.f32 0.044715, %v2330_v37  ;;  %v2331_v10 = vmul.f32 %v2328_v12, %v2317_v5 }
0x1644   : > { %v2338_v39 = vadd.f32 %v2335_v7, %v2322_v59 }
0x1645   : > { %v2336_v43 = vadd.f32 %v2333_v9, %v2314_v61  ;;  %v2334_v14 = vmul.f32 0.044715, %v2331_v10 }
0x1646   : > { %v2341_v16 = vmul.f32 0.7978846, %v2338_v39 }
0x1647   : > { %v2339_v19 = vmul.f32 0.7978846, %v2336_v43  ;;  %v2337_v36 = vadd.f32 %v2334_v14, %v2317_v5 }
0x1648   : > { %3256 = vtanh.f32 %v2341_v16 }
0x1649   : > { %3258 = vtanh.f32 %v2339_v19  ;;  %v2340_v41 = vmul.f32 0.7978846, %v2337_v36 }
0x164b   : > { %3260 = vtanh.f32 %v2340_v41 }
0x1652   : > { %v3257_v21 = vpop.eup %3256 }
0x1653   : > { %v3259_v22 = vpop.eup %3258  ;;  %v2347_v25 = vadd.f32 1.0, %v3257_v21 }
0x1654   : > { %v2345_v27 = vadd.f32 1.0, %v3259_v22 }
0x1655   : > { %v3261_v28 = vpop.eup %3260  ;;  %v2350_v2 = vmul.f32 0.5, %v2347_v25 }
0x1656   : > { %v2348_v29 = vmul.f32 0.5, %v2345_v27  ;;  %v2346_v30 = vadd.f32 1.0, %v3261_v28 }
0x1657   : > { %v2353_v33 = vmul.f32 %v2350_v2, %v2322_v59 }
0x1658   : > { %v2349_v32 = vmul.f32 0.5, %v2346_v30  ;;  %v2351_v34 = vmul.f32 %v2348_v29, %v2314_v61 }
0x1659   : > { %v2355_v35 = vpack.c.bf16 %v2353_v33, %v2353_v33 }
0x165a   : > { %v2352_v46 = vmul.f32 %v2349_v32, %v2317_v5 }
0x165c   : > { %v2354_v51 = vpack.c.bf16 %v2352_v46, %v2351_v34 }
0x165e   : > { %3011 = vmatprep.mubr.msk.bf16.mxu1 %vm1430_vm7, %v2354_v51 }
0x165f   : > { %3012 = vmatmul.mubr.msk.bf16.vlgmr.msra.gmra.mrb[40].mxu1 %vm1430_vm7, %v2355_v35 }
0x1732   : > { %v3013_v38 = vpop.f32.mrb[40].mxu1 }
0x1733   : > { %v2429_v23 = vpop.f32.mrb[41].mxu1 }
0x1734   : > { %v2441_v40 = vadd.f32 %v2429_v23, %v3878_v0  ;;  %v3014_v42 = vpop.f32.mrb[42].mxu1 }
0x1735   : > { %v2432_v47 = vpop.f32.mrb[43].mxu1 }
0x1736   : > { %v2446_v49 = vadd.f32 %v2445_v24, %v2441_v40 }
0x1738   : > { %v2449_v26 = vsel %vm2448_vm8, %v2446_v49, 0.0 }
0x1739   : > { %2450 = vadd.xlane.f32.xlu0 %v2449_v26 }
0x17c6   : > { %v2451_v48 = vpop.xlane.xlu0 %2450 }
0x17c7   : > { %v2452_v44 = vmul.f32 0.03125, %v2451_v48 }
0x17c9   : > { %v2453_v50 = vsub.f32 %v2446_v49, %v2452_v44 }
0x17cb   : > { %v2454_v52 = vmul.f32 %v2453_v50, %v2453_v50 }
0x17cd   : > { %v2455_v11 = vsel %vm2448_vm8, %v2454_v52, 0.0 }
0x17ce   : > { %2456 = vadd.xlane.f32.xlu1 %v2455_v11 }
0x185b   : > { %v2457_v4 = vpop.xlane.xlu1 %2456 }
0x185c   : > { %v2458_v0 = vmul.f32 0.03125, %v2457_v4 }
0x185e   : > { %v2459_v53 = vadd.f32 1e-12, %v2458_v0 }
0x1860   : > { %3262 = vrsqrt.f32 %v2459_v53 }
0x186a   : > { %v3263_v15 = vpop.eup %3262 }
0x186b   : > { %v2461_v18 = vmul.f32 %v3263_v15, %v2453_v50 }
0x186d   : > { %v2462_v17 = vmul.f32 %v2461_v18, %v2447_v54 }
0x186f   : > { %v2466_v13 = vadd.f32 %v2464_v55, %v2462_v17 }
0x1871   : > { %v2467_v20 = vpack.c.bf16 %v2466_v13, %v2466_v13 }
0x1873   : > { %3020 = vmatmul.mubr.msk.bf16.vlgmr.msra.gmra.mrb[40].mxu0 %vm540_vm1, %v2467_v20 }
0x1946   : > { %v2522_v57 = vpop.f32.mrb[40].mxu0 }
0x1947   : > { %v2523_v58 = vadd.f32 %v2522_v57, %v2472_v56  ;;  %v3021_v8 = vpop.f32.mrb[41].mxu0 }
0x1948   : > { %v2525_v59 = vpop.f32.mrb[42].mxu0 }
0x1949   : > { %v2717_v60 = vmul.f32 -1.442695, %v2523_v58  ;;  %v3022_v61 = vpop.f32.mrb[43].mxu0 }
0x194b   : > { %3264 = vpow2.f32 %v2717_v60 }
0x1955   : > { %v3265_v62 = vpop.eup %3264 }
0x1956   : > { %v2531_v63 = vadd.f32 1.0, %v3265_v62 }
0x1958   : > { %3266 = vrcp.f32 %v2531_v63 }
0x1962   : > { %v3267_v1 = vpop.eup %3266 }
0x1963   : > { %2534 = vst [vmem:[%s432_s20] sm:$0x1] %v3267_v1 }
0x1964   : > { %3281 = shalt.err (!%p3278_p3)
}
0x1965   : > { %s3282_s15 = scalar_lea.hbm %s3947_s27, 16  ;;  %s3286_s23 = scalar_lea.hbm %s4002_s13, 32 }
0x1966   : > { %p3283_p4 = scmp.ne.s32.totalorder %s3947_s27, %s3282_s15  ;;  %p3287_p9 = scmp.lt.u32.totalorder %s3947_s27, %s4002_s13 }
0x1967   : > { %p3288_p10 = scmp.lt.u32.totalorder %s3286_s23, %s3282_s15  ;;  %p3290_p12 = scmp.lt.u32.totalorder %s3282_s15, %s3947_s27 }
0x1968   : > { %p3284_p7 = pnand %p3283_p4, %p3451_p5 }
0x1969   : > { %p3289_p11 = por %p3288_p10, %p3287_p9 }
0x196a   : > { %p3285_p8 = pneg %p3284_p7 }
0x196b   : > { %p3291_p13 = por %p3290_p12, %p3289_p11 }
0x196d   : > { %p3292_p0 = pnand %p3291_p13, %p3285_p8 }
0x196f   : > { %3295 = shalt.err (!%p3292_p0)
}
0x1970   : > { %3052 = dma.vmem_to_hbm [thread:$0]  (%p3451_p5), %s3949_s22, 16, %s3947_s27, %s2536_s17  }
0x1971 PF: > { %p3058_p1 = scmp.ge.s32.totalorder %s3330_s28, 2  ;;  %s2560_s14 = sand.u32 1, %s3318_s25  }
0x1972   : > { %s2561_s21 = scalar_lea.sflag [#allocation3], %s2560_s14 }
0x1973   : > { %p3055_p2 = pnand %p3058_p1, %p3455_p6 }
0x1975   : > { %3313 = dma.done.wait (!%p3055_p2), %s2561_s21, 16  }
0x1976   : > { %3315 = vsyncadd (!%p3055_p2), %s2561_s21, 4294967280  ;;  %s4022_s28 = sld [smem:[#allocation6_spill]]  ;;  %s4023_s30 = sld [smem:[#allocation5_spill]] }
0x1977   : > { %s4024_s27 = sld [smem:[#allocation7_spill]]  ;;  %s4025_s25 = smov %s3322_s26 }
0x197c   : > { %p23_p3 = scmp.ge.s32.totalorder %s4022_s28, 4   ;;  %s4026_s26 = smov %s4023_s30 }
0x197e   :  { %25 = sbr.rel (!%p23_p3) target bundleno = 3 (0x3), region = 114 }
0x1985   :  { %2565 = vsyncpa [#allocation3], 1 }
0x1986   :  { %2567 = vsyncpa [#allocation3 + $0x1], 1 }

</bundles_post_ra>
